<compile_context>
chip_gen: v5e
topology: v5e:2x2
jax: 0.10.0
libtpu: 0.0.40
codegen_flags: <defaults>
</compile_context>

<pallas_src>
import functools

import numpy as np

import jax
import jax.numpy as jnp
from jax.experimental import pallas as pl
from jax.experimental.pallas import tpu as pltpu

IMG_FEAT_DIM = 1280    # image_input_dim
FEAT_DIM = 709         # feature_input_dim
FEAT_PAD = 768         # 709 -> lane-dense multiple of 128
NUM_CLASSES = 3
STEM_C = 32            # stem conv output channels (EfficientNet-B0 stem width)
HID1 = 128
HID2_PAD = 128         # 64-wide hidden padded to 128 lanes
OUT_PAD = 128          # lane-dense padded logits width (sliced to 3 outside)
VMEM_LIMIT = 32 << 20  # explicit scoped-VMEM limit, safe on v5e/v6e/v7x


def _full_spec(shape):
    # Full-array block (single grid step).
    return pl.BlockSpec(shape, lambda *_: (0,) * len(shape))


# ----------------------------- Pallas kernels -------------------------------

def stem_pool_kernel(x_ref, w_ref, b_ref, mask_ref, o_ref, *, taps, M, inv_pool):
    """One image per grid step.

    x_ref : (1, 4C, Npix) bf16  channels-major space-to-depth image
    w_ref : (4, 32, 4C)   bf16  one (32,4C) weight per 2x2 tap
    b_ref : (32, 1)       f32
    mask  : (1, M)        f32   0 on wrap-around ("seam") columns, 1 elsewhere
    o_ref : (1, 32, 1)    bf16  pooled stem features
    """
    y = None
    for k, off in enumerate(taps):               # taps = (0, 1, Wo+1, Wo+2)
        xs = x_ref[0, :, off:off + M]            # (4C, M) bf16 shifted window
        yk = jnp.dot(w_ref[k], xs, preferred_element_type=jnp.float32)  # (32, M)
        y = yk if y is None else y + yk
    y = y + b_ref[...]                           # bias, broadcast over lanes
    y = y * jax.nn.sigmoid(y)                    # SiLU in fp32 (VPU/EUP)
    y = y * mask_ref[...]                        # drop seam columns before pool
    o_ref[0] = (jnp.sum(y, axis=1, keepdims=True) * inv_pool).astype(o_ref.dtype)


def head_kernel(pooled_ref, feat_ref, wp_ref, bp_ref, w1i_ref, w1f_ref, b1_ref,
                w2_ref, b2_ref, w3_ref, b3_ref, o_ref):
    """1x1 projection + SiLU, then fc1(img)+fc1(feat) -> ReLU -> fc2 -> ReLU -> fc3.
    All hidden widths lane-dense (128); dropouts are identity at inference."""
    img = (jnp.dot(pooled_ref[...], wp_ref[...], preferred_element_type=jnp.float32)
           + bp_ref[...])
    img = img * jax.nn.sigmoid(img)                                 # (B, 1280) f32
    h = (jnp.dot(img.astype(w1i_ref.dtype), w1i_ref[...],
                 preferred_element_type=jnp.float32)
         + jnp.dot(feat_ref[...], w1f_ref[...], preferred_element_type=jnp.float32)
         + b1_ref[...])
    h = jnp.maximum(h, 0.0)
    # dropout1: identity at inference
    h = jnp.dot(h.astype(w2_ref.dtype), w2_ref[...],
                preferred_element_type=jnp.float32) + b2_ref[...]
    h = jnp.maximum(h, 0.0)
    # dropout2: identity at inference
    o_ref[...] = jnp.dot(h.astype(w3_ref.dtype), w3_ref[...],
                         preferred_element_type=jnp.float32) + b3_ref[...]


# ------------------------------- JAX glue -----------------------------------

def _stem_weights_s2d(w_stem, in_c):
    """(9*C, 32) im2col-ordered stem weights -> (4, 32, 4C) space-to-depth taps.

    Tap k = 2*dh + dw; within a tap, the 4C input channels are ordered
    a*2C + b*C + c where (a, b) is the pixel parity inside the 2x2 block."""
    w3x3 = w_stem.reshape(3, 3, in_c, STEM_C)          # [kh, kw, c, oc]
    w = jnp.zeros((2, 2, 2, 2, in_c, STEM_C), w_stem.dtype)
    for dh in range(2):
        for dw in range(2):
            for a in range(2):
                for b in range(2):
                    kh, kw = 2 * dh + a, 2 * dw + b
                    if kh < 3 and kw < 3:
                        w = w.at[dh, dw, a, b].set(w3x3[kh, kw])
    w = w.reshape(4, 4 * in_c, STEM_C)                 # (tap, 4C, 32)
    return jnp.transpose(w, (0, 2, 1))                 # (tap, 32, 4C)


def _space_to_depth(x_nchw, Ho, Wo):
    """(B, C, H, W) bf16 -> (B, 4C, (Ho+1)*(Wo+1)) channels-major s2d tensor
    including the conv pad-1 border (stride-2, 3x3)."""
    B, C, H, W = x_nchw.shape
    Hp, Wp = 2 * (Ho + 1), 2 * (Wo + 1)
    xp = jnp.pad(x_nchw, ((0, 0), (0, 0), (1, Hp - H - 1), (1, Wp - W - 1)))
    x2 = xp.reshape(B, C, Ho + 1, 2, Wo + 1, 2)
    x2 = x2.transpose(0, 3, 5, 1, 2, 4)                # (B, 2a, 2b, C, Ho+1, Wo+1)
    return x2.reshape(B, 4 * C, (Ho + 1) * (Wo + 1))


def init_params(key, in_c=3):
    ks = jax.random.split(key, 8)

    def n(k, shape, scale=0.05):
        return jax.random.normal(k, shape, jnp.float32) * scale

    return dict(
        w_stem=n(ks[0], (9 * in_c, STEM_C)),
        b_stem=jnp.zeros((1, STEM_C), jnp.float32),
        w_proj=n(ks[1], (STEM_C, IMG_FEAT_DIM)),
        b_proj=jnp.zeros((1, IMG_FEAT_DIM), jnp.float32),
        w1=n(ks[2], (IMG_FEAT_DIM + FEAT_DIM, HID1)),
        b1=n(ks[3], (1, HID1)),
        w2=n(ks[4], (HID1, 64)),
        b2=n(ks[5], (1, 64)),
        w3=n(ks[6], (64, NUM_CLASSES)),
        b3=n(ks[7], (1, NUM_CLASSES)),
    )


def efficientnet_ifof_forward(params, images, features):
    """images: (B, S, C, H, W) float32 (NCHW per frame);  features: (B, FEAT_DIM)."""
    B, S, C, H, W = images.shape
    Ho = (H - 1) // 2 + 1
    Wo = (W - 1) // 2 + 1
    Npix = (Ho + 1) * (Wo + 1)
    M = Ho * (Wo + 1) - 1                 # shifted-window length (incl. seam cols)
    taps = (0, 1, Wo + 1, Wo + 2)         # pixel offsets of the 2x2 s2d taps
    C4 = 4 * C

    # Only the last timestep reaches the head -> backbone on it only; cast to
    # bf16 up front so no fp32 image intermediate ever hits HBM.
    x_last = images[:, -1].astype(jnp.bfloat16)        # (B, C, H, W)
    x2 = _space_to_depth(x_last, Ho, Wo)               # (B, 4C, Npix) bf16

    w_s2d = _stem_weights_s2d(params["w_stem"], C).astype(jnp.bfloat16)  # (4,32,4C)
    b_stem = params["b_stem"].reshape(STEM_C, 1).astype(jnp.float32)

    # Seam mask: window columns r with r % (Wo+1) == Wo correspond to wrap-around
    # conv windows and MUST be excluded from the pool (bias+SiLU makes them nonzero).
    mask_np = ((np.arange(M) % (Wo + 1)) != Wo).astype(np.float32).reshape(1, M)
    mask = jnp.asarray(mask_np)

    # --- fused stem conv + SiLU + masked global-avg-pool, one image per step ---
    pooled = pl.pallas_call(
        functools.partial(stem_pool_kernel, taps=taps, M=M,
                          inv_pool=1.0 / float(Ho * Wo)),
        out_shape=jax.ShapeDtypeStruct((B, STEM_C, 1), jnp.bfloat16),
        grid=(B,),
        in_specs=[
            pl.BlockSpec((1, C4, Npix), lambda n: (n, 0, 0)),     # s2d image
            pl.BlockSpec((4, STEM_C, C4), lambda n: (0, 0, 0)),   # tap weights (resident)
            pl.BlockSpec((STEM_C, 1), lambda n: (0, 0)),          # bias
            pl.BlockSpec((1, M), lambda n: (0, 0)),               # seam mask
        ],
        out_specs=pl.BlockSpec((1, STEM_C, 1), lambda n: (n, 0, 0)),
        compiler_params=pltpu.CompilerParams(
            dimension_semantics=("parallel",),
            vmem_limit_bytes=VMEM_LIMIT),
    )(x2, w_s2d, b_stem, mask)

    pooled = pooled.reshape(B, STEM_C)                            # (B, 32) bf16

    feats = features.reshape(B, -1)
    feats = jnp.pad(feats, ((0, 0), (0, FEAT_PAD - FEAT_DIM))).astype(jnp.bfloat16)

    # Head weights: fc1 split into image/feature halves (no XLA concat, no K=1989),
    # feature rows zero-padded 709->768, hidden 64->128, logits 3->128 (lane-dense).
    w_proj = params["w_proj"].astype(jnp.bfloat16)                # (32, 1280)
    b_proj = params["b_proj"].astype(jnp.float32)                 # (1, 1280)
    w1_img = params["w1"][:IMG_FEAT_DIM].astype(jnp.bfloat16)     # (1280, 128)
    w1_feat = jnp.pad(params["w1"][IMG_FEAT_DIM:],
                      ((0, FEAT_PAD - FEAT_DIM), (0, 0))).astype(jnp.bfloat16)
    b1 = params["b1"].astype(jnp.float32)
    w2 = jnp.pad(params["w2"],
                 ((0, 0), (0, HID2_PAD - params["w2"].shape[1]))).astype(jnp.bfloat16)
    b2 = jnp.pad(params["b2"],
                 ((0, 0), (0, HID2_PAD - params["b2"].shape[1]))).astype(jnp.float32)
    w3 = jnp.pad(params["w3"],
                 ((0, HID2_PAD - params["w3"].shape[0]),
                  (0, OUT_PAD - NUM_CLASSES))).astype(jnp.bfloat16)
    b3 = jnp.pad(params["b3"], ((0, 0), (0, OUT_PAD - NUM_CLASSES))).astype(jnp.float32)

    # --- fused projection + MLP head (single grid step, lane-dense output) ---
    logits_pad = pl.pallas_call(
        head_kernel,
        out_shape=jax.ShapeDtypeStruct((B, OUT_PAD), jnp.float32),
        grid=(1,),
        in_specs=[_full_spec(pooled.shape), _full_spec(feats.shape),
                  _full_spec(w_proj.shape), _full_spec(b_proj.shape),
                  _full_spec(w1_img.shape), _full_spec(w1_feat.shape),
                  _full_spec(b1.shape),
                  _full_spec(w2.shape), _full_spec(b2.shape),
                  _full_spec(w3.shape), _full_spec(b3.shape)],
        out_specs=_full_spec((B, OUT_PAD)),
        compiler_params=pltpu.CompilerParams(
            dimension_semantics=("arbitrary",),
            vmem_limit_bytes=VMEM_LIMIT),
    )(pooled, feats, w_proj, b_proj, w1_img, w1_feat, b1, w2, b2, w3, b3)

    return logits_pad[:, :NUM_CLASSES]


if __name__ == "__main__":
    key = jax.random.PRNGKey(0)
    k_img, k_feat, k_par = jax.random.split(key, 3)

    B, S, C, H, W = 2, 2, 3, 32, 32
    images = jax.random.normal(k_img, (B, S, C, H, W), jnp.float32)
    features = jax.random.normal(k_feat, (B, FEAT_DIM), jnp.float32)
    params = init_params(k_par, in_c=C)

    fwd = jax.jit(efficientnet_ifof_forward)
    out = jax.block_until_ready(fwd(params, images, features))

    assert out.shape == (B, NUM_CLASSES), out.shape
    assert out.dtype == jnp.float32
    print("KERNEL_OK")
</pallas_src>

<mosaic_0001>
module attributes {stable_mosaic.version = 11 : i64} {
  func.func @stem_pool_kernel(%arg0: i32, %arg1: memref<1x12x289xbf16, #tpu.memory_space<vmem>>, %arg2: memref<4x32x12xbf16, #tpu.memory_space<vmem>>, %arg3: memref<32x1xf32, #tpu.memory_space<vmem>>, %arg4: memref<1x271xf32, #tpu.memory_space<vmem>>, %arg5: memref<1x32x1xbf16, #tpu.memory_space<vmem>>) attributes {dimension_semantics = [#tpu.dimension_semantics<parallel>], iteration_bounds = array<i64: 2>, scalar_prefetch = 0 : i64, scratch_operands = 0 : i64, tpu.core_type = #tpu.core_type<tc>, window_params = [{transform_indices = @transform_0, window_bounds = array<i64: 1, 12, 289>}, {pipeline_mode = #tpu.pipeline_mode<synchronous>, transform_indices = @transform_1, window_bounds = array<i64: 4, 32, 12>}, {pipeline_mode = #tpu.pipeline_mode<synchronous>, transform_indices = @transform_2, window_bounds = array<i64: 32, 1>}, {pipeline_mode = #tpu.pipeline_mode<synchronous>, transform_indices = @transform_3, window_bounds = array<i64: 1, 271>}, {transform_indices = @transform_4, window_bounds = array<i64: 1, 32, 1>}]} {
    %c0 = arith.constant 0 : index
    %c0_0 = arith.constant 0 : index
    %c0_1 = arith.constant 0 : index
    %0 = vector.load %arg1[%c0, %c0_0, %c0_1] : memref<1x12x289xbf16, #tpu.memory_space<vmem>>, vector<1x12x271xbf16>
    %1 = vector.shape_cast %0 : vector<1x12x271xbf16> to vector<12x271xbf16>
    %c0_2 = arith.constant 0 : index
    %c0_3 = arith.constant 0 : index
    %c0_4 = arith.constant 0 : index
    %2 = vector.load %arg2[%c0_2, %c0_3, %c0_4] : memref<4x32x12xbf16, #tpu.memory_space<vmem>>, vector<1x32x12xbf16>
    %3 = vector.shape_cast %2 : vector<1x32x12xbf16> to vector<32x12xbf16>
    %cst = arith.constant dense<0.000000e+00> : vector<32x271xf32>
    %4 = tpu.matmul %3, %1, %cst {dimension_numbers = #tpu.dot_dimension_numbers<[1], [0], [0], [1], [0, 0, 1, 1], [], []>} : vector<32x12xbf16>, vector<12x271xbf16>, vector<32x271xf32> -> vector<32x271xf32>
    %c0_5 = arith.constant 0 : index
    %c0_6 = arith.constant 0 : index
    %c1 = arith.constant 1 : index
    %5 = vector.load %arg1[%c0_5, %c0_6, %c1] : memref<1x12x289xbf16, #tpu.memory_space<vmem>>, vector<1x12x271xbf16>
    %6 = vector.shape_cast %5 : vector<1x12x271xbf16> to vector<12x271xbf16>
    %c1_7 = arith.constant 1 : index
    %c0_8 = arith.constant 0 : index
    %c0_9 = arith.constant 0 : index
    %7 = vector.load %arg2[%c1_7, %c0_8, %c0_9] : memref<4x32x12xbf16, #tpu.memory_space<vmem>>, vector<1x32x12xbf16>
    %8 = vector.shape_cast %7 : vector<1x32x12xbf16> to vector<32x12xbf16>
    %cst_10 = arith.constant dense<0.000000e+00> : vector<32x271xf32>
    %9 = tpu.matmul %8, %6, %cst_10 {dimension_numbers = #tpu.dot_dimension_numbers<[1], [0], [0], [1], [0, 0, 1, 1], [], []>} : vector<32x12xbf16>, vector<12x271xbf16>, vector<32x271xf32> -> vector<32x271xf32>
    %10 = arith.addf %4, %9 : vector<32x271xf32>
    %c0_11 = arith.constant 0 : index
    %c0_12 = arith.constant 0 : index
    %c17 = arith.constant 17 : index
    %11 = vector.load %arg1[%c0_11, %c0_12, %c17] : memref<1x12x289xbf16, #tpu.memory_space<vmem>>, vector<1x12x271xbf16>
    %12 = vector.shape_cast %11 : vector<1x12x271xbf16> to vector<12x271xbf16>
    %c2 = arith.constant 2 : index
    %c0_13 = arith.constant 0 : index
    %c0_14 = arith.constant 0 : index
    %13 = vector.load %arg2[%c2, %c0_13, %c0_14] : memref<4x32x12xbf16, #tpu.memory_space<vmem>>, vector<1x32x12xbf16>
    %14 = vector.shape_cast %13 : vector<1x32x12xbf16> to vector<32x12xbf16>
    %cst_15 = arith.constant dense<0.000000e+00> : vector<32x271xf32>
    %15 = tpu.matmul %14, %12, %cst_15 {dimension_numbers = #tpu.dot_dimension_numbers<[1], [0], [0], [1], [0, 0, 1, 1], [], []>} : vector<32x12xbf16>, vector<12x271xbf16>, vector<32x271xf32> -> vector<32x271xf32>
    %16 = arith.addf %10, %15 : vector<32x271xf32>
    %c0_16 = arith.constant 0 : index
    %c0_17 = arith.constant 0 : index
    %c18 = arith.constant 18 : index
    %17 = vector.load %arg1[%c0_16, %c0_17, %c18] : memref<1x12x289xbf16, #tpu.memory_space<vmem>>, vector<1x12x271xbf16>
    %18 = vector.shape_cast %17 : vector<1x12x271xbf16> to vector<12x271xbf16>
    %c3 = arith.constant 3 : index
    %c0_18 = arith.constant 0 : index
    %c0_19 = arith.constant 0 : index
    %19 = vector.load %arg2[%c3, %c0_18, %c0_19] : memref<4x32x12xbf16, #tpu.memory_space<vmem>>, vector<1x32x12xbf16>
    %20 = vector.shape_cast %19 : vector<1x32x12xbf16> to vector<32x12xbf16>
    %cst_20 = arith.constant dense<0.000000e+00> : vector<32x271xf32>
    %21 = tpu.matmul %20, %18, %cst_20 {dimension_numbers = #tpu.dot_dimension_numbers<[1], [0], [0], [1], [0, 0, 1, 1], [], []>} : vector<32x12xbf16>, vector<12x271xbf16>, vector<32x271xf32> -> vector<32x271xf32>
    %22 = arith.addf %16, %21 : vector<32x271xf32>
    %c0_21 = arith.constant 0 : index
    %c0_22 = arith.constant 0 : index
    %23 = vector.load %arg3[%c0_21, %c0_22] : memref<32x1xf32, #tpu.memory_space<vmem>>, vector<32x1xf32>
    %24 = vector.broadcast %23 : vector<32x1xf32> to vector<32x271xf32>
    %25 = arith.addf %22, %24 : vector<32x271xf32>
    %26 = arith.negf %25 : vector<32x271xf32>
    %27 = math.exp %26 : vector<32x271xf32>
    %cst_23 = arith.constant 1.000000e+00 : f32
    %28 = vector.broadcast %cst_23 : f32 to vector<32x271xf32>
    %29 = arith.addf %28, %27 : vector<32x271xf32>
    %30 = arith.divf %28, %29 : vector<32x271xf32>
    %31 = arith.mulf %25, %30 : vector<32x271xf32>
    %c0_24 = arith.constant 0 : index
    %c0_25 = arith.constant 0 : index
    %32 = vector.load %arg4[%c0_24, %c0_25] : memref<1x271xf32, #tpu.memory_space<vmem>>, vector<1x271xf32>
    %33 = vector.broadcast %32 : vector<1x271xf32> to vector<32x271xf32>
    %34 = arith.mulf %31, %33 : vector<32x271xf32>
    %cst_26 = arith.constant dense<0.000000e+00> : vector<32xf32>
    %35 = vector.multi_reduction <add>, %34, %cst_26 [1] : vector<32x271xf32> to vector<32xf32>
    %36 = vector.shape_cast %35 : vector<32xf32> to vector<32x1xf32>
    %cst_27 = arith.constant 3.906250e-03 : f32
    %37 = vector.broadcast %cst_27 : f32 to vector<32x1xf32>
    %38 = arith.mulf %36, %37 : vector<32x1xf32>
    %39 = arith.truncf %38 : vector<32x1xf32> to vector<32x1xbf16>
    %c0_28 = arith.constant 0 : index
    %c0_29 = arith.constant 0 : index
    %c0_30 = arith.constant 0 : index
    %40 = vector.load %arg5[%c0_28, %c0_29, %c0_30] : memref<1x32x1xbf16, #tpu.memory_space<vmem>>, vector<1x32x1xbf16>
    %41 = vector.shape_cast %40 : vector<1x32x1xbf16> to vector<32x1xbf16>
    %42 = vector.shape_cast %39 : vector<32x1xbf16> to vector<1x32x1xbf16>
    tpu.vector_store %arg5[%c0_28, %c0_29, %c0_30], %42 {strides = array<i32>} : memref<1x32x1xbf16, #tpu.memory_space<vmem>>, vector<1x32x1xbf16>,
    return
  }
  func.func @transform_0(%arg0: i32) -> (i32, i32, i32) {
    %c0_i32 = arith.constant 0 : i32
    %c0_i32_0 = arith.constant 0 : i32
    %c0_i32_1 = arith.constant 0 : i32
    return %arg0, %c0_i32, %c0_i32_0 : i32, i32, i32
  }
  func.func @transform_1(%arg0: i32) -> (i32, i32, i32) {
    %c0_i32 = arith.constant 0 : i32
    %c0_i32_0 = arith.constant 0 : i32
    %c0_i32_1 = arith.constant 0 : i32
    %c0_i32_2 = arith.constant 0 : i32
    return %c0_i32, %c0_i32_0, %c0_i32_1 : i32, i32, i32
  }
  func.func @transform_2(%arg0: i32) -> (i32, i32) {
    %c0_i32 = arith.constant 0 : i32
    %c0_i32_0 = arith.constant 0 : i32
    %c0_i32_1 = arith.constant 0 : i32
    return %c0_i32, %c0_i32_0 : i32, i32
  }
  func.func @transform_3(%arg0: i32) -> (i32, i32) {
    %c0_i32 = arith.constant 0 : i32
    %c0_i32_0 = arith.constant 0 : i32
    %c0_i32_1 = arith.constant 0 : i32
    return %c0_i32, %c0_i32_0 : i32, i32
  }
  func.func @transform_4(%arg0: i32) -> (i32, i32, i32) {
    %c0_i32 = arith.constant 0 : i32
    %c0_i32_0 = arith.constant 0 : i32
    %c0_i32_1 = arith.constant 0 : i32
    return %arg0, %c0_i32, %c0_i32_0 : i32, i32, i32
  }
}

module attributes {stable_mosaic.version = 11 : i64} {
  func.func @head_kernel(%arg0: i32, %arg1: memref<2x32xbf16, #tpu.memory_space<vmem>>, %arg2: memref<2x768xbf16, #tpu.memory_space<vmem>>, %arg3: memref<32x1280xbf16, #tpu.memory_space<vmem>>, %arg4: memref<1x1280xf32, #tpu.memory_space<vmem>>, %arg5: memref<1280x128xbf16, #tpu.memory_space<vmem>>, %arg6: memref<768x128xbf16, #tpu.memory_space<vmem>>, %arg7: memref<1x128xf32, #tpu.memory_space<vmem>>, %arg8: memref<128x128xbf16, #tpu.memory_space<vmem>>, %arg9: memref<1x128xf32, #tpu.memory_space<vmem>>, %arg10: memref<128x128xbf16, #tpu.memory_space<vmem>>, %arg11: memref<1x128xf32, #tpu.memory_space<vmem>>, %arg12: memref<2x128xf32, #tpu.memory_space<vmem>>) attributes {dimension_semantics = [#tpu.dimension_semantics<arbitrary>], iteration_bounds = array<i64: 1>, scalar_prefetch = 0 : i64, scratch_operands = 0 : i64, tpu.core_type = #tpu.core_type<tc>, window_params = [{pipeline_mode = #tpu.pipeline_mode<synchronous>, transform_indices = @transform_0, window_bounds = array<i64: 2, 32>}, {pipeline_mode = #tpu.pipeline_mode<synchronous>, transform_indices = @transform_1, window_bounds = array<i64: 2, 768>}, {pipeline_mode = #tpu.pipeline_mode<synchronous>, transform_indices = @transform_2, window_bounds = array<i64: 32, 1280>}, {pipeline_mode = #tpu.pipeline_mode<synchronous>, transform_indices = @transform_3, window_bounds = array<i64: 1, 1280>}, {pipeline_mode = #tpu.pipeline_mode<synchronous>, transform_indices = @transform_4, window_bounds = array<i64: 1280, 128>}, {pipeline_mode = #tpu.pipeline_mode<synchronous>, transform_indices = @transform_5, window_bounds = array<i64: 768, 128>}, {pipeline_mode = #tpu.pipeline_mode<synchronous>, transform_indices = @transform_6, window_bounds = array<i64: 1, 128>}, {pipeline_mode = #tpu.pipeline_mode<synchronous>, transform_indices = @transform_7, window_bounds = array<i64: 128, 128>}, {pipeline_mode = #tpu.pipeline_mode<synchronous>, transform_indices = @transform_8, window_bounds = array<i64: 1, 128>}, {pipeline_mode = #tpu.pipeline_mode<synchronous>, transform_indices = @transform_9, window_bounds = array<i64: 128, 128>}, {pipeline_mode = #tpu.pipeline_mode<synchronous>, transform_indices = @transform_10, window_bounds = array<i64: 1, 128>}, {pipeline_mode = #tpu.pipeline_mode<synchronous>, transform_indices = @transform_11, window_bounds = array<i64: 2, 128>}]} {
    %c0 = arith.constant 0 : index
    %c0_0 = arith.constant 0 : index
    %0 = vector.load %arg1[%c0, %c0_0] : memref<2x32xbf16, #tpu.memory_space<vmem>>, vector<2x32xbf16>
    %c0_1 = arith.constant 0 : index
    %c0_2 = arith.constant 0 : index
    %1 = vector.load %arg3[%c0_1, %c0_2] : memref<32x1280xbf16, #tpu.memory_space<vmem>>, vector<32x1280xbf16>
    %cst = arith.constant dense<0.000000e+00> : vector<2x1280xf32>
    %2 = tpu.matmul %0, %1, %cst {dimension_numbers = #tpu.dot_dimension_numbers<[1], [0], [0], [1], [0, 0, 1, 1], [], []>} : vector<2x32xbf16>, vector<32x1280xbf16>, vector<2x1280xf32> -> vector<2x1280xf32>
    %c0_3 = arith.constant 0 : index
    %c0_4 = arith.constant 0 : index
    %3 = vector.load %arg4[%c0_3, %c0_4] : memref<1x1280xf32, #tpu.memory_space<vmem>>, vector<1x1280xf32>
    %4 = vector.broadcast %3 : vector<1x1280xf32> to vector<2x1280xf32>
    %5 = arith.addf %2, %4 : vector<2x1280xf32>
    %6 = arith.negf %5 : vector<2x1280xf32>
    %7 = math.exp %6 : vector<2x1280xf32>
    %cst_5 = arith.constant 1.000000e+00 : f32
    %8 = vector.broadcast %cst_5 : f32 to vector<2x1280xf32>
    %9 = arith.addf %8, %7 : vector<2x1280xf32>
    %10 = arith.divf %8, %9 : vector<2x1280xf32>
    %11 = arith.mulf %5, %10 : vector<2x1280xf32>
    %12 = arith.truncf %11 : vector<2x1280xf32> to vector<2x1280xbf16>
    %c0_6 = arith.constant 0 : index
    %c0_7 = arith.constant 0 : index
    %13 = vector.load %arg5[%c0_6, %c0_7] : memref<1280x128xbf16, #tpu.memory_space<vmem>>, vector<1280x128xbf16>
    %cst_8 = arith.constant dense<0.000000e+00> : vector<2x128xf32>
    %14 = tpu.matmul %12, %13, %cst_8 {dimension_numbers = #tpu.dot_dimension_numbers<[1], [0], [0], [1], [0, 0, 1, 1], [], []>} : vector<2x1280xbf16>, vector<1280x128xbf16>, vector<2x128xf32> -> vector<2x128xf32>
    %c0_9 = arith.constant 0 : index
    %c0_10 = arith.constant 0 : index
    %15 = vector.load %arg2[%c0_9, %c0_10] : memref<2x768xbf16, #tpu.memory_space<vmem>>, vector<2x768xbf16>
    %c0_11 = arith.constant 0 : index
    %c0_12 = arith.constant 0 : index
    %16 = vector.load %arg6[%c0_11, %c0_12] : memref<768x128xbf16, #tpu.memory_space<vmem>>, vector<768x128xbf16>
    %cst_13 = arith.constant dense<0.000000e+00> : vector<2x128xf32>
    %17 = tpu.matmul %15, %16, %cst_13 {dimension_numbers = #tpu.dot_dimension_numbers<[1], [0], [0], [1], [0, 0, 1, 1], [], []>} : vector<2x768xbf16>, vector<768x128xbf16>, vector<2x128xf32> -> vector<2x128xf32>
    %18 = arith.addf %14, %17 : vector<2x128xf32>
    %c0_14 = arith.constant 0 : index
    %c0_15 = arith.constant 0 : index
    %19 = vector.load %arg7[%c0_14, %c0_15] : memref<1x128xf32, #tpu.memory_space<vmem>>, vector<1x128xf32>
    %20 = vector.broadcast %19 : vector<1x128xf32> to vector<2x128xf32>
    %21 = arith.addf %18, %20 : vector<2x128xf32>
    %cst_16 = arith.constant 0.000000e+00 : f32
    %22 = vector.broadcast %cst_16 : f32 to vector<2x128xf32>
    %23 = arith.maximumf %21, %22 : vector<2x128xf32>
    %24 = arith.truncf %23 : vector<2x128xf32> to vector<2x128xbf16>
    %c0_17 = arith.constant 0 : index
    %c0_18 = arith.constant 0 : index
    %25 = vector.load %arg8[%c0_17, %c0_18] : memref<128x128xbf16, #tpu.memory_space<vmem>>, vector<128x128xbf16>
    %cst_19 = arith.constant dense<0.000000e+00> : vector<2x128xf32>
    %26 = tpu.matmul %24, %25, %cst_19 {dimension_numbers = #tpu.dot_dimension_numbers<[1], [0], [0], [1], [0, 0, 1, 1], [], []>} : vector<2x128xbf16>, vector<128x128xbf16>, vector<2x128xf32> -> vector<2x128xf32>
    %c0_20 = arith.constant 0 : index
    %c0_21 = arith.constant 0 : index
    %27 = vector.load %arg9[%c0_20, %c0_21] : memref<1x128xf32, #tpu.memory_space<vmem>>, vector<1x128xf32>
    %28 = vector.broadcast %27 : vector<1x128xf32> to vector<2x128xf32>
    %29 = arith.addf %26, %28 : vector<2x128xf32>
    %cst_22 = arith.constant 0.000000e+00 : f32
    %30 = vector.broadcast %cst_22 : f32 to vector<2x128xf32>
    %31 = arith.maximumf %29, %30 : vector<2x128xf32>
    %32 = arith.truncf %31 : vector<2x128xf32> to vector<2x128xbf16>
    %c0_23 = arith.constant 0 : index
    %c0_24 = arith.constant 0 : index
    %33 = vector.load %arg10[%c0_23, %c0_24] : memref<128x128xbf16, #tpu.memory_space<vmem>>, vector<128x128xbf16>
    %cst_25 = arith.constant dense<0.000000e+00> : vector<2x128xf32>
    %34 = tpu.matmul %32, %33, %cst_25 {dimension_numbers = #tpu.dot_dimension_numbers<[1], [0], [0], [1], [0, 0, 1, 1], [], []>} : vector<2x128xbf16>, vector<128x128xbf16>, vector<2x128xf32> -> vector<2x128xf32>
    %c0_26 = arith.constant 0 : index
    %c0_27 = arith.constant 0 : index
    %35 = vector.load %arg11[%c0_26, %c0_27] : memref<1x128xf32, #tpu.memory_space<vmem>>, vector<1x128xf32>
    %36 = vector.broadcast %35 : vector<1x128xf32> to vector<2x128xf32>
    %37 = arith.addf %34, %36 : vector<2x128xf32>
    %c0_28 = arith.constant 0 : index
    %c0_29 = arith.constant 0 : index
    %38 = vector.load %arg12[%c0_28, %c0_29] : memref<2x128xf32, #tpu.memory_space<vmem>>, vector<2x128xf32>
    tpu.vector_store %arg12[%c0_28, %c0_29], %37 {strides = array<i32>} : memref<2x128xf32, #tpu.memory_space<vmem>>, vector<2x128xf32>,
    return
  }
  func.func @transform_0(%arg0: i32) -> (i32, i32) {
    %c0_i32 = arith.constant 0 : i32
    %c0_i32_0 = arith.constant 0 : i32
    %c0_i32_1 = arith.constant 0 : i32
    return %c0_i32, %c0_i32_0 : i32, i32
  }
  func.func @transform_1(%arg0: i32) -> (i32, i32) {
    %c0_i32 = arith.constant 0 : i32
    %c0_i32_0 = arith.constant 0 : i32
    %c0_i32_1 = arith.constant 0 : i32
    return %c0_i32, %c0_i32_0 : i32, i32
  }
  func.func @transform_2(%arg0: i32) -> (i32, i32) {
    %c0_i32 = arith.constant 0 : i32
    %c0_i32_0 = arith.constant 0 : i32
    %c0_i32_1 = arith.constant 0 : i32
    return %c0_i32, %c0_i32_0 : i32, i32
  }
  func.func @transform_3(%arg0: i32) -> (i32, i32) {
    %c0_i32 = arith.constant 0 : i32
    %c0_i32_0 = arith.constant 0 : i32
    %c0_i32_1 = arith.constant 0 : i32
    return %c0_i32, %c0_i32_0 : i32, i32
  }
  func.func @transform_4(%arg0: i32) -> (i32, i32) {
    %c0_i32 = arith.constant 0 : i32
    %c0_i32_0 = arith.constant 0 : i32
    %c0_i32_1 = arith.constant 0 : i32
    return %c0_i32, %c0_i32_0 : i32, i32
  }
  func.func @transform_5(%arg0: i32) -> (i32, i32) {
    %c0_i32 = arith.constant 0 : i32
    %c0_i32_0 = arith.constant 0 : i32
    %c0_i32_1 = arith.constant 0 : i32
    return %c0_i32, %c0_i32_0 : i32, i32
  }
  func.func @transform_6(%arg0: i32) -> (i32, i32) {
    %c0_i32 = arith.constant 0 : i32
    %c0_i32_0 = arith.constant 0 : i32
    %c0_i32_1 = arith.constant 0 : i32
    return %c0_i32, %c0_i32_0 : i32, i32
  }
  func.func @transform_7(%arg0: i32) -> (i32, i32) {
    %c0_i32 = arith.constant 0 : i32
    %c0_i32_0 = arith.constant 0 : i32
    %c0_i32_1 = arith.constant 0 : i32
    return %c0_i32, %c0_i32_0 : i32, i32
  }
  func.func @transform_8(%arg0: i32) -> (i32, i32) {
    %c0_i32 = arith.constant 0 : i32
    %c0_i32_0 = arith.constant 0 : i32
    %c0_i32_1 = arith.constant 0 : i32
    return %c0_i32, %c0_i32_0 : i32, i32
  }
  func.func @transform_9(%arg0: i32) -> (i32, i32) {
    %c0_i32 = arith.constant 0 : i32
    %c0_i32_0 = arith.constant 0 : i32
    %c0_i32_1 = arith.constant 0 : i32
    return %c0_i32, %c0_i32_0 : i32, i32
  }
  func.func @transform_10(%arg0: i32) -> (i32, i32) {
    %c0_i32 = arith.constant 0 : i32
    %c0_i32_0 = arith.constant 0 : i32
    %c0_i32_1 = arith.constant 0 : i32
    return %c0_i32, %c0_i32_0 : i32, i32
  }
  func.func @transform_11(%arg0: i32) -> (i32, i32) {
    %c0_i32 = arith.constant 0 : i32
    %c0_i32_0 = arith.constant 0 : i32
    %c0_i32_1 = arith.constant 0 : i32
    return %c0_i32, %c0_i32_0 : i32, i32
  }
}

</mosaic_0001>

<bundles_post_ra>
// kernel: efficientnet_ifof_forward.2
= control target key start
LH: loop header
LB: loop body
LE: loop exit
PB: predicated region body
PF: predicated region fallthrough
CT: control target
= control target key end

     0   :  { %s1216_s15 = smov 0   ;;  %s1724_s0 = inlined_call_operand.vmem [shape: bf16[2,12,289], index: 0, kind: input, shape index: {}]   ;;  %s1725_s1 = inlined_call_operand.vmem [shape: bf16[4,32,12], index: 1, kind: input, shape index: {}]   ;;  %s1726_s2 = inlined_call_operand.vmem [shape: f32[32,1], index: 2, kind: input, shape index: {}]   ;;  %s1727_s3 = inlined_call_operand.vmem [shape: f32[1,271], index: 3, kind: input, shape index: {}]   ;;  %s1728_s4 = inlined_call_operand.vmem [shape: bf16[2,32,1], index: 4, kind: output, shape index: {}]  }
   0x1 LB: > { %s1001_s16 = sadd.s32 4294967295, %s1185_s15   ;;  %p1005_p0 = scmp.ge.s32.totalorder %s1185_s15, 1  ;;  %s1185_s15 = sphi %s1216_s15, %s14_s15  }
   0x2   : > { %p162_p1 = scmp.lt.s32.totalorder %s1185_s15, 3 }
   0x4   : > { %p163_p2 = pnand %p1005_p0, %p162_p1 }
   0x5   : > { %p188_p3 = scmp.lt.s32.totalorder (!%p163_p2), %s1001_s16, 1  ;;  %s1187_s21 = smov (!%p163_p2), 127  }
   0x6   : > { %166 = sbr.rel (%p163_p2) target bundleno = 534 (0x216), region = 36  ;;  %s1188_s22 = smov (!%p163_p2), 111  }
   0x7   : > { %s1189_s23 = smov (!%p163_p2), 110  }
   0xb   : > { %s1762_s16 = smov (!%p188_p3, %s1001_s16), 1  ;;  %vm251_vm0 = vcmask 1045504   ;;  %v1107_v10 = vld [vmem:[%s1725_s1] sm:$0xff]  ;;  %vm244_vm1 = vcmask 97280   ;;  %vm421_vm2 = vcmask 908288   ;;  %v1238_v12 = vld [vmem:[%s1725_s1 + $0x8] sm:$0xff] }
   0xc   : > { %s1115_s17 = smul.u32 24, %s1762_s16  ;;  %vm241_vm3 = vcmask 1039360   ;;  %v1247_v16 = vld [vmem:[%s1725_s1 + $0x20] sm:$0xff]  ;;  %v1109_v20 = vld [vmem:[%s1725_s1 + $0x10] sm:$0xff]  ;;  %vm529_vm4 = vcmask 900096   ;;  %v1112_v34 = vld [vmem:[%s1725_s1 + $0x28] sm:$0xff] }
   0xd   : > { %v1110_v35 = vld [vmem:[%s1725_s1 + $0x18] sm:$0xff]  ;;  %v1113_v42 = vld [vmem:[%s1725_s1 + $0x30] sm:$0xff]  ;;  %v616_v43 = vld [vmem:[%s1726_s2] sm:$0xff]  ;;  %v1190_v44 = vmov 0   ;;  %s1103_s26 = sshll.u32 %s1762_s16, 4 }
   0xe   : > { %s192_s20 = scalar_lea.vmem %s1724_s0, %s1115_s17  ;;  %1128 = vset.pattern.permute.xlu0 %v1190_v44  ;;  %1129 = vset.pattern.permute.xlu1 %v1190_v44  ;;  %v1114_v45 = vld [vmem:[%s1725_s1 + $0x38] sm:$0xff]  ;;  %v617_v46 = vld [vmem:[%s1726_s2 + $0x8] sm:$0xff]  ;;  %v618_v48 = vld [vmem:[%s1726_s2 + $0x10] sm:$0xff]  ;;  %s197_s29 = scalar_lea.vmem %s1728_s4, %s1103_s26 }
   0xf   : > { %v1031_v0 = vld [vmem:[%s192_s20 + $0x8] sm:$0xf]  ;;  %v1106_v1 = vld [vmem:[%s192_s20 + $0x10] sm:$0x30]  ;;  %v1104_v2 = vld [vmem:[%s192_s20 + $0x4] sm:$0xf]  ;;  %1130 = vset.pattern.permute.xlu2 %v1190_v44 }
  0x10   : > { %v1032_v3 = vor.u32 %v1106_v1, %v1031_v0  ;;  %v1025_v4 = vld [vmem:[%s192_s20 + $0xc] sm:$0x30]  ;;  %v1023_v6 = vld [vmem:[%s192_s20] sm:$0xf]  ;;  %v1105_v7 = vld [vmem:[%s192_s20 + $0x8] sm:$0x30] }
  0x11   : > { %v1028_v5 = vor.u32 %v1104_v2, %v1025_v4  ;;  %v1024_v8 = vor.u32 %v1105_v7, %v1023_v6  ;;  %v619_v47 = vld [vmem:[%s1726_s2 + $0x18] sm:$0xff] }
  0x12   : > { %239 = vrot.lane.b32.xlu0 %v1032_v3, %s1187_s21  ;;  %v341_v22 = vsel %vm251_vm0, %v1032_v3, 0 }
  0x13   : > { %237 = vrot.lane.b32.xlu1 %v1028_v5, %s1187_s21  ;;  %417 = vrot.lane.b32.xlu2 %v1028_v5, %s1188_s22  ;;  %v335_v9 = vsel %vm251_vm0, %v1024_v8, 0  ;;  %v338_v27 = vsel %vm251_vm0, %v1028_v5, 0 }
  0x14   : > { %350 = vmatpush.bf16.msra.mxu3 %v335_v9 }
  0x17   : > { %1047 = vmatmul.msk.bf16.vlgmr.msra.gmra.mxu3 %vm244_vm1, %v1107_v10 }
  0x1a   : > { %235 = vrot.lane.b32.xlu0 %v1024_v8, %s1187_s21 }
  0x1b   : > { %415 = vrot.lane.b32.xlu1 %v1024_v8, %s1188_s22  ;;  %419 = vrot.lane.b32.xlu2 %v1032_v3, %s1188_s22 }
  0x22   : > { %525 = vrot.lane.b32.xlu0 %v1028_v5, %s1189_s23 }
  0x23   : > { %527 = vrot.lane.b32.xlu1 %v1032_v3, %s1189_s23  ;;  %523 = vrot.lane.b32.xlu2 %v1024_v8, %s1189_s23 }
  0x27   : > { %1048 = vmatmul.msk.bf16.gmra.mxu3 %vm244_vm1, %v1238_v12 }
  0x2a   : > { %622 = vperm.xlu0 %1128, %v616_v43  }
  0x2b   : > { %627 = vperm.xlu1 %1129, %v617_v46   ;;  %632 = vperm.xlu2 %1130, %v618_v48  }
  0x33   : > { %637 = vperm.xlu1 %1129, %v619_v47  }
  0x6d   : > { %v418_v11 = vpop.permute.xlu2 %417 }
  0x75   : > { %v420_v13 = vpop.permute.xlu2 %419 }
  0x76   : > { %v423_v14 = vsel %vm421_vm2, %v418_v11, %v420_v13  ;;  %v437_v31 = vsel %vm251_vm0, %v420_v13, 0 }
  0x77   : > { %v434_v15 = vsel %vm251_vm0, %v423_v14, 0 }
  0x78   : > { %465 = vmatpush.bf16.msrb.mxu3 %v434_v15 }
  0x7b   : > { %1067 = vmatmul.msk.bf16.vlgmr.msrb.gmra.mxu3 %vm244_vm1, %v1247_v16 }
  0x7d   : > { %v524_v32 = vpop.permute.xlu2 %523 }
  0x84   : > { %v240_v17 = vpop.permute.xlu0 %239 }
  0x85   : > { %v238_v18 = vpop.permute.xlu1 %237  ;;  %v259_v19 = vsel %vm251_vm0, %v240_v17, 0 }
  0x86   : > { %306 = vmatpush.bf16.msra.mxu2 %v259_v19  ;;  %v243_v21 = vsel %vm241_vm3, %v238_v18, %v240_v17 }
  0x87   : > { %v256_v23 = vsel %vm251_vm0, %v243_v21, 0 }
  0x88   : > { %287 = vmatpush.bf16.msra.mxu1 %v256_v23 }
  0x89   : > { %1037 = vmatmul.msk.bf16.vlgmr.msra.gmra.mxu2 %vm244_vm1, %v1109_v20 }
  0x8b   : > { %1035 = vmatmul.msk.bf16.vlgmr.msra.gmra.mxu1 %vm244_vm1, %v1109_v20  ;;  %1068 = vmatmul.msk.bf16.gmra.mxu3 %vm244_vm1, %v1112_v34 }
  0x8c   : > { %388 = vmatpush.bf16.msrb.mxu1 %v341_v22  ;;  %v236_v24 = vpop.permute.xlu0 %235 }
  0x8d   : > { %v416_v25 = vpop.permute.xlu1 %415  ;;  %v242_v26 = vsel %vm241_vm3, %v236_v24, %v238_v18 }
  0x8e   : > { %v253_v28 = vsel %vm251_vm0, %v242_v26, 0  ;;  %v422_v29 = vsel %vm421_vm2, %v416_v25, %v418_v11 }
  0x8f   : > { %268 = vmatpush.bf16.msra.mxu0 %v253_v28  ;;  %v431_v30 = vsel %vm251_vm0, %v422_v29, 0 }
  0x90   : > { %446 = vmatpush.bf16.msrb.mxu2 %v431_v30 }
  0x92   : > { %1033 = vmatmul.msk.bf16.vlgmr.msra.gmra.mxu0 %vm244_vm1, %v1109_v20 }
  0x93   : > { %369 = vmatpush.bf16.msrb.mxu0 %v338_v27 }
  0x94   : > { %v526_v33 = vpop.permute.xlu0 %525 }
  0x95   : > { %v530_v36 = vsel %vm529_vm4, %v524_v32, %v526_v33  ;;  %v528_v37 = vpop.permute.xlu1 %527 }
  0x96   : > { %v539_v38 = vsel %vm251_vm0, %v530_v36, 0  ;;  %v531_v39 = vsel %vm529_vm4, %v526_v33, %v528_v37  ;;  %v545_v40 = vsel %vm251_vm0, %v528_v37, 0 }
  0x97   : > { %484 = vmatpush.bf16.msra.mxu0 %v437_v31  ;;  %v542_v41 = vsel %vm251_vm0, %v531_v39, 0  ;;  %592 = vmatpush.bf16.msra.mxu3 %v545_v40 }
  0x98   : > { %554 = vmatpush.bf16.msra.mxu1 %v539_v38  ;;  %573 = vmatpush.bf16.msra.mxu2 %v542_v41 }
  0x99   : > { %1038 = vmatmul.msk.bf16.gmra.mxu2 %vm244_vm1, %v1110_v35 }
  0x9a   : > { %v352_v49 = vpop.f32.mrf.mxu3 }
  0x9b   : > { %1036 = vmatmul.msk.bf16.gmra.mxu1 %vm244_vm1, %v1110_v35  ;;  %1087 = vmatmul.msk.bf16.vlgmr.msra.gmra.mxu3 %vm244_vm1, %v1113_v42 }
  0x9c   : > { %v623_v21 = vpop.permute.xlu0 %622 }
  0x9d   : > { %v628_v37 = vpop.permute.xlu1 %627 }
  0xa2   : > { %1034 = vmatmul.msk.bf16.gmra.mxu0 %vm244_vm1, %v1110_v35  ;;  %v354_v51 = vpop.f32.mrf.mxu3 }
  0xa9   : > { %1065 = vmatmul.msk.bf16.vlgmr.msrb.gmra.mxu2 %vm244_vm1, %v1247_v16 }
  0xaa   : > { %v357_v55 = vpop.f32.mrf.mxu3 }
  0xab   : > { %1051 = vmatmul.msk.bf16.vlgmr.msrb.gmra.mxu1 %vm244_vm1, %v1107_v10  ;;  %1088 = vmatmul.msk.bf16.gmra.mxu3 %vm244_vm1, %v1114_v45 }
  0xb2   : > { %1049 = vmatmul.msk.bf16.vlgmr.msrb.gmra.mxu0 %vm244_vm1, %v1107_v10  ;;  %v1320_v60 = vpop.f32.mrf.mxu3 }
  0xb9   : > { %1066 = vmatmul.msk.bf16.gmra.mxu2 %vm244_vm1, %v1112_v34 }
  0xbb   : > { %1052 = vmatmul.msk.bf16.gmra.mxu1 %vm244_vm1, %v1238_v12 }
  0xc2   : > { %1050 = vmatmul.msk.bf16.gmra.mxu0 %vm244_vm1, %v1238_v12 }
  0xc9   : > { %1085 = vmatmul.msk.bf16.vlgmr.msra.gmra.mxu2 %vm244_vm1, %v1113_v42 }
  0xcb   : > { %1083 = vmatmul.msk.bf16.vlgmr.msra.gmra.mxu1 %vm244_vm1, %v1113_v42 }
  0xd2   : > { %1069 = vmatmul.msk.bf16.vlgmr.msra.gmra.mxu0 %vm244_vm1, %v1247_v16 }
  0xd9   : > { %1086 = vmatmul.msk.bf16.gmra.mxu2 %vm244_vm1, %v1114_v45 }
  0xdb   : > { %1084 = vmatmul.msk.bf16.gmra.mxu1 %vm244_vm1, %v1114_v45 }
  0xe2   : > { %1070 = vmatmul.msk.bf16.gmra.mxu0 %vm244_vm1, %v1112_v34 }
  0xfe   : > { %v467_v1 = vpop.f32.mrf.mxu3 }
 0x106   : > { %v469_v6 = vpop.f32.mrf.mxu3 }
 0x108   : > { %v289_v50 = vpop.f32.mrf.mxu1 }
 0x10c   : > { %v308_v52 = vpop.f32.mrf.mxu2 }
 0x10e   : > { %v1330_v10 = vpop.f32.mrf.mxu3 }
 0x10f   : > { %v270_v53 = vpop.f32.mrf.mxu0 }
 0x110   : > { %v291_v54 = vpop.f32.mrf.mxu1  ;;  %v353_v15 = vadd.f32 %v352_v49, %v270_v53 }
 0x114   : > { %v310_v56 = vpop.f32.mrf.mxu2 }
 0x116   : > { %v1336_v16 = vpop.f32.mrf.mxu3 }
 0x117   : > { %v272_v57 = vpop.f32.mrf.mxu0 }
 0x118   : > { %v1316_v58 = vpop.f32.mrf.mxu1  ;;  %v355_v26 = vadd.f32 %v354_v51, %v272_v57 }
 0x11c   : > { %v1318_v59 = vpop.f32.mrf.mxu2 }
 0x11e   : > { %v594_v32 = vpop.f32.mrf.mxu3 }
 0x11f   : > { %v275_v61 = vpop.f32.mrf.mxu0 }
 0x120   : > { %v1322_v62 = vpop.f32.mrf.mxu1  ;;  %v358_v46 = vadd.f32 %v357_v55, %v275_v61 }
 0x124   : > { %v1324_v63 = vpop.f32.mrf.mxu2 }
 0x127   : > { %v1326_v0 = vpop.f32.mrf.mxu0 }
 0x128   : > { %v390_v2 = vpop.f32.mrf.mxu1 }
 0x129   : > { %v391_v29 = vadd.f32 %v390_v2, %v308_v52 }
 0x12c   : > { %v448_v3 = vpop.f32.mrf.mxu2 }
 0x12d   : > { %v496_v17 = vadd.f32 %v448_v3, %v353_v15 }
 0x12f   : > { %v371_v4 = vpop.f32.mrf.mxu0 }
 0x130   : > { %v392_v5 = vpop.f32.mrf.mxu1  ;;  %v372_v18 = vadd.f32 %v371_v4, %v289_v50 }
 0x131   : > { %v393_v51 = vadd.f32 %v392_v5, %v310_v56  ;;  %v596_v56 = vpop.f32.mrf.mxu3 }
 0x132   : > { %v497_v24 = vadd.f32 %v467_v1, %v372_v18  ;;  %v1355_v1 = vpop.permute.xlu2 %632 }
 0x134   : > { %v450_v7 = vpop.f32.mrf.mxu2 }
 0x135   : > { %v499_v30 = vadd.f32 %v450_v7, %v355_v26 }
 0x137   : > { %v373_v8 = vpop.f32.mrf.mxu0 }
 0x138   : > { %v1328_v9 = vpop.f32.mrf.mxu1  ;;  %v374_v31 = vadd.f32 %v373_v8, %v291_v54 }
 0x13a   : > { %v500_v42 = vadd.f32 %v469_v6, %v374_v31 }
 0x13c   : > { %v453_v11 = vpop.f32.mrf.mxu2 }
 0x13d   : > { %v502_v52 = vadd.f32 %v453_v11, %v358_v46 }
 0x13f   : > { %v376_v12 = vpop.f32.mrf.mxu0 }
 0x140   : > { %v1332_v13 = vpop.f32.mrf.mxu1  ;;  %v377_v4 = vadd.f32 %v376_v12, %v1316_v58 }
 0x144   : > { %v1334_v14 = vpop.f32.mrf.mxu2 }
 0x147   : > { %v378_v19 = vpop.f32.mrf.mxu0 }
 0x148   : > { %v556_v20 = vpop.f32.mrf.mxu1  ;;  %v379_v58 = vadd.f32 %v378_v19, %v1322_v62 }
 0x149   : > { %v604_v22 = vadd.f32 %v556_v20, %v496_v17  ;;  %v503_v20 = vadd.f32 %v1330_v10, %v377_v4  ;;  %v1384_v10 = vadd.f32 %v1332_v13, %v1324_v63 }
 0x14b   : > { %v1338_v23 = vadd.f32 %v623_v21, %v604_v22  ;;  %v360_v22 = vadd.f32 %v1320_v60, %v1326_v0 }
 0x14c   : > { %v575_v25 = vpop.f32.mrf.mxu2 }
 0x14d   : > { %v1089_v27 = vmul.f32 -1.442695, %v1338_v23  ;;  %v605_v28 = vadd.f32 %v575_v25, %v497_v24  ;;  %v505_v60 = vadd.f32 %v1334_v14, %v360_v22 }
 0x14f   : > { %1131 = vpow2.f32 %v1089_v27  ;;  %v1341_v33 = vadd.f32 %v623_v21, %v605_v28  ;;  %v486_v34 = vpop.f32.mrf.mxu0  ;;  %v396_v27 = vadd.f32 %v1328_v9, %v1318_v59  ;;  %v1395_v9 = vadd.f32 %v1336_v16, %v379_v58 }
 0x150   : > { %v498_v35 = vadd.f32 %v486_v34, %v391_v29  ;;  %v558_v36 = vpop.f32.mrf.mxu1 }
 0x151   : > { %v1090_v38 = vmul.f32 -1.442695, %v1341_v33  ;;  %v607_v39 = vadd.f32 %v558_v36, %v499_v30 }
 0x152   : > { %v606_v40 = vadd.f32 %v594_v32, %v498_v35 }
 0x153   : > { %1133 = vpow2.f32 %v1090_v38  ;;  %v1344_v41 = vadd.f32 %v628_v37, %v607_v39  ;;  %v599_v38 = vpop.f32.mrf.mxu3 }
 0x154   : > { %v1346_v43 = vadd.f32 %v623_v21, %v606_v40  ;;  %v577_v44 = vpop.f32.mrf.mxu2 }
 0x155   : > { %v1132_v45 = vpop.eup %1131  ;;  %v1092_v47 = vmul.f32 -1.442695, %v1344_v41  ;;  %v608_v48 = vadd.f32 %v577_v44, %v500_v42 }
 0x156   : > { %v1349_v49 = vadd.f32 1.0, %v1132_v45  ;;  %v1091_v50 = vmul.f32 -1.442695, %v1346_v43 }
 0x157   : > { %1135 = vpow2.f32 %v1092_v47  ;;  %v1352_v53 = vadd.f32 %v628_v37, %v608_v48  ;;  %v488_v54 = vpop.f32.mrf.mxu0 }
 0x158   : > { %1137 = vrcp.f32 %v1349_v49  ;;  %v561_v57 = vpop.f32.mrf.mxu1  ;;  %v501_v61 = vadd.f32 %v488_v54, %v393_v51  ;;  %v709_v30 = vand.u32 2147483647, %v1349_v49  ;;  %v711_v63 = vand.u32 2147483648, %v1349_v49  ;;  %v638_v51 = vpop.permute.xlu1 %637 }
 0x159   : > { %v1134_v2 = vpop.eup %1133  ;;  %1139 = vpow2.f32 %v1091_v50  ;;  %v1093_v55 = vmul.f32 -1.442695, %v1352_v53  ;;  %v610_v3 = vadd.f32 %v561_v57, %v502_v52  ;;  %vm705_vm5 = vweird.f32 %v1349_v49 }
 0x15a   : > { %v1359_v6 = vadd.f32 1.0, %v1134_v2  ;;  %v609_v5 = vadd.f32 %v596_v56, %v501_v61  ;;  %vm1415_vm7 = vcmp.eq.f32.partialorder %v709_v30, 8.507059e+37  ;;  %v712_v47 = vor.u32 1.1754944e-38, %v711_v63 }
 0x15b   : > { %1141 = vpow2.f32 %v1093_v55  ;;  %v1362_v7 = vadd.f32 %v1355_v1, %v610_v3 }
 0x15c   : > { %1143 = vrcp.f32 %v1359_v6  ;;  %v1365_v11 = vadd.f32 %v628_v37, %v609_v5  ;;  %v580_v17 = vpop.f32.mrf.mxu2  ;;  %v726_v34 = vand.u32 2147483648, %v1359_v6  ;;  %vm720_vm9 = vweird.f32 %v1359_v6 }
 0x15d   : > { %v1136_v8 = vpop.eup %1135  ;;  %v1095_v15 = vmul.f32 -1.442695, %v1362_v7  ;;  %v611_v62 = vadd.f32 %v580_v17, %v503_v20  ;;  %v724_v54 = vand.u32 2147483647, %v1359_v6 }
 0x15e   : > { %v1368_v18 = vpop.eup %1137  ;;  %v1371_v12 = vadd.f32 1.0, %v1136_v8  ;;  %v1094_v25 = vmul.f32 -1.442695, %v1365_v11  ;;  %v1430_v57 = vor.u32 1.1754944e-38, %v726_v34 }
 0x15f   : > { %v1140_v21 = vpop.eup %1139  ;;  %v701_v24 = vmul.f32 %v1368_v18, %v1349_v49  ;;  %1145 = vpow2.f32 %v1095_v15  ;;  %v491_v26 = vpop.f32.mrf.mxu0  ;;  %v1405_v35 = vadd.f32 %v1355_v1, %v611_v62  ;;  %vm706_vm6 = vweird.f32 %v1368_v18 }
 0x160   : > { %1147 = vrcp.f32 %v1371_v12  ;;  %v1387_v28 = vadd.f32 1.0, %v1140_v21  ;;  %v504_v59 = vadd.f32 %v491_v26, %v396_v27  ;;  %v563_v14 = vpop.f32.mrf.mxu1  ;;  %v756_v40 = vand.u32 2147483648, %v1371_v12  ;;  %vm1424_vm8 = vmor %vm705_vm5, %vm706_vm6 }
 0x161   : > { %v1142_v19 = vpop.eup %1141  ;;  %v702_v0 = vsub.f32 1.0, %v701_v24  ;;  %1149 = vpow2.f32 %v1094_v25  ;;  %v613_v45 = vadd.f32 %v563_v14, %v505_v60  ;;  %v1096_v2 = vmul.f32 -1.442695, %v1405_v35 }
 0x162   : > { %v1389_v29 = vpop.eup %1143  ;;  %v1392_v31 = vadd.f32 1.0, %v1142_v19  ;;  %v612_v44 = vadd.f32 %v599_v38, %v504_v59  ;;  %v754_v4 = vand.u32 2147483647, %v1371_v12  ;;  %vm750_vm11 = vweird.f32 %v1371_v12 }
 0x163   : > { %v703_v32 = vmul.f32 %v1368_v18, %v702_v0  ;;  %v716_v13 = vmul.f32 %v1389_v29, %v1359_v6  ;;  %vm721_vm10 = vweird.f32 %v1389_v29  ;;  %v1443_v5 = vor.u32 1.1754944e-38, %v756_v40 }
 0x164   : > { %1151 = vrcp.f32 %v1392_v31  ;;  %v771_v50 = vand.u32 2147483648, %v1392_v31  ;;  %v1446_v8 = vadd.f32 %v1355_v1, %v612_v44  ;;  %v1448_v15 = vadd.f32 %v638_v51, %v613_v45  ;;  %v582_v21 = vpop.f32.mrf.mxu2  ;;  %vm1498_vm2 = vmor %vm720_vm9, %vm721_vm10 }
 0x165   : > { %v1146_v16 = vpop.eup %1145  ;;  %v704_v36 = vadd.f32 %v1368_v18, %v703_v32  ;;  %v717_v37 = vsub.f32 1.0, %v716_v13  ;;  %1153 = vrcp.f32 %v1387_v28  ;;  %vm765_vm13 = vweird.f32 %v1392_v31 }
 0x166   : > { %v1410_v39 = vpop.eup %1147  ;;  %v1413_v42 = vadd.f32 1.0, %v1146_v16  ;;  %v769_v58 = vand.u32 2147483647, %v1392_v31  ;;  %v1457_v20 = vor.u32 1.1754944e-38, %v771_v50  ;;  %vm1461_vm14 = vcmp.eq.f32.partialorder %v724_v54, 8.507059e+37 }
 0x167   : > { %v746_v48 = vmul.f32 %v1410_v39, %v1371_v12  ;;  %v1150_v55 = vpop.eup %1149  ;;  %v708_v61 = vsel %vm1424_vm8, %v1368_v18, %v704_v36  ;;  %v718_v49 = vmul.f32 %v1389_v29, %v717_v37  ;;  %vm751_vm12 = vweird.f32 %v1410_v39  ;;  %v493_v22 = vpop.f32.mrf.mxu0 }
 0x168   : > { %1155 = vrcp.f32 %v1413_v42  ;;  %v713_v1 = vsel %vm1415_vm7, %v712_v47, %v708_v61  ;;  %v1466_v26 = vadd.f32 1.0, %v1150_v55  ;;  %vm795_vm15 = vweird.f32 %v1413_v42  ;;  %v601_v37 = vpop.f32.mrf.mxu3  ;;  %vm1514_vm4 = vmor %vm750_vm11, %vm751_vm12 }
 0x169   : > { %v747_v3 = vsub.f32 1.0, %v746_v48  ;;  %1157 = vpow2.f32 %v1096_v2  ;;  %v719_v27 = vadd.f32 %v1389_v29, %v718_v49  ;;  %v1097_v19 = vmul.f32 -1.442695, %v1446_v8 }
 0x16a   : > { %v1439_v56 = vpop.eup %1151  ;;  %vm1473_vm0 = vcmp.eq.f32.partialorder %v754_v4, 8.507059e+37  ;;  %v1098_v30 = vmul.f32 -1.442695, %v1448_v15  ;;  %v614_v59 = vadd.f32 %v582_v21, %v1395_v9  ;;  %v507_v32 = vadd.f32 %v493_v22, %v1384_v10 }
 0x16b   : > { %v1450_v17 = vpop.eup %1153  ;;  %v761_v18 = vmul.f32 %v1439_v56, %v1392_v31  ;;  %v748_v25 = vmul.f32 %v1410_v39, %v747_v3  ;;  %vm1483_vm1 = vcmp.eq.f32.partialorder %v769_v58, 8.507059e+37  ;;  %v799_v16 = vand.u32 2147483647, %v1413_v42 }
 0x16c   : > { %v731_v63 = vmul.f32 %v1450_v17, %v1387_v28  ;;  %v801_v36 = vand.u32 2147483648, %v1413_v42  ;;  %1159 = vpow2.f32 %v1097_v19  ;;  %v1492_v10 = vadd.f32 %v638_v51, %v614_v59 }
 0x16d   : > { %v762_v62 = vsub.f32 1.0, %v761_v18  ;;  %v749_v9 = vadd.f32 %v1410_v39, %v748_v25  ;;  %v615_v38 = vadd.f32 %v601_v37, %v507_v32  ;;  %vm766_vm3 = vweird.f32 %v1439_v56 }
 0x16e   : > { %v1471_v60 = vpop.eup %1155  ;;  %1161 = vpow2.f32 %v1098_v30  ;;  %v723_v47 = vsel %vm1498_vm2, %v1389_v29, %v719_v27  ;;  %v1099_v48 = vmul.f32 -1.442695, %v1492_v10  ;;  %v732_v6 = vsub.f32 1.0, %v731_v63  ;;  %vm1528_vm6 = vmor %vm765_vm13, %vm766_vm3 }
 0x16f   : > { %v763_v13 = vmul.f32 %v1439_v56, %v762_v62  ;;  %v791_v34 = vmul.f32 %v1471_v60, %v1413_v42  ;;  %v1158_v46 = vpop.eup %1157  ;;  %v1508_v50 = vadd.f32 %v638_v51, %v615_v38  ;;  %1163 = vrcp.f32 %v1466_v26 }
 0x170   : > { %vm796_vm5 = vweird.f32 %v1471_v60  ;;  %v1521_v29 = vadd.f32 1.0, %v1158_v46  ;;  %v753_v51 = vsel %vm1514_vm4, %v1410_v39, %v749_v9  ;;  %1165 = vpow2.f32 %v1099_v48 }
 0x171   : > { %v764_v44 = vadd.f32 %v1439_v56, %v763_v13  ;;  %v792_v45 = vsub.f32 1.0, %v791_v34  ;;  %v1100_v2 = vmul.f32 -1.442695, %v1508_v50  ;;  %v733_v55 = vmul.f32 %v1450_v17, %v732_v6  ;;  %vm1545_vm7 = vmor %vm795_vm15, %vm796_vm5 }
 0x172   : > { %v728_v61 = vsel %vm1461_vm14, %v1430_v57, %v723_v47  ;;  %1167 = vrcp.f32 %v1521_v29  ;;  %v1160_v31 = vpop.eup %1159  ;;  %v880_v3 = vmul.f32 %v713_v1, %v1338_v23  ;;  %vm1549_vm8 = vcmp.eq.f32.partialorder %v799_v16, 8.507059e+37 }
 0x173   : > { %v793_v54 = vmul.f32 %v1471_v60, %v792_v45  ;;  %v768_v49 = vsel %vm1528_vm6, %v1439_v56, %v764_v44  ;;  %v802_v57 = vor.u32 1.1754944e-38, %v801_v36  ;;  %1169 = vpow2.f32 %v1100_v2 }
 0x174   : > { %v1162_v56 = vpop.eup %1161  ;;  %v758_v58 = vsel %vm1473_vm0, %v1443_v5, %v753_v51  ;;  %v734_v42 = vadd.f32 %v1450_v17, %v733_v55  ;;  %vm736_vm9 = vweird.f32 %v1450_v17  ;;  %v881_v21 = vmul.f32 %v728_v61, %v1341_v33  ;;  %v892_v5 = vld [vmem:[%s1727_s3] sm:$0x7] }
 0x175   : > { %v794_v39 = vadd.f32 %v1471_v60, %v793_v54  ;;  %v773_v22 = vsel %vm1483_vm1, %v1457_v20, %v768_v49  ;;  %v1565_v1 = vadd.f32 1.0, %v1162_v56  ;;  %v741_v24 = vand.u32 2147483648, %v1387_v28  ;;  %v1571_v25 = vpop.eup %1163 }
 0x176   : > { %v814_v27 = vand.u32 2147483647, %v1521_v29  ;;  %v816_v62 = vand.u32 2147483648, %v1521_v29  ;;  %vm735_vm10 = vweird.f32 %v1387_v28  ;;  %v739_v33 = vand.u32 2147483647, %v1387_v28  ;;  %v1166_v19 = vpop.eup %1165 }
 0x177   : > { %v798_v23 = vsel %vm1545_vm7, %v1471_v60, %v794_v39  ;;  %v1578_v20 = vmul.f32 %v758_v58, %v1344_v41  ;;  %v1582_v0 = vadd.f32 1.0, %v1160_v31  ;;  %1171 = vrcp.f32 %v1565_v1  ;;  %vm1587_vm11 = vmor %vm735_vm10, %vm736_vm9 }
 0x178   : > { %v803_v60 = vsel %vm1549_vm8, %v802_v57, %v798_v23  ;;  %v1168_v59 = vpop.eup %1167  ;;  %v884_v28 = vmul.f32 %v773_v22, %v1352_v53  ;;  %vm810_vm12 = vweird.f32 %v1521_v29  ;;  %v1593_v41 = vadd.f32 1.0, %v1166_v19 }
 0x179   : > { %v738_v32 = vsel %vm1587_vm11, %v1450_v17, %v734_v42  ;;  %v1170_v63 = vpop.eup %1169  ;;  %v806_v13 = vmul.f32 %v1168_v59, %v1521_v29  ;;  %v742_v14 = vor.u32 1.1754944e-38, %v741_v24  ;;  %v1599_v34 = vperm.slane %v892_v5, 0 }
 0x17a   : > { %v1601_v16 = vperm.slane %v892_v5, 1  ;;  %v1604_v36 = vmul.f32 %v803_v60, %v1362_v7  ;;  %vm1606_vm13 = vcmp.eq.f32.partialorder %v814_v27, 8.507059e+37  ;;  %v817_v37 = vor.u32 1.1754944e-38, %v816_v62 }
 0x17b   : > { %1173 = vrcp.f32 %v1593_v41  ;;  %vm740_vm14 = vcmp.eq.f32.partialorder %v739_v33, 8.507059e+37  ;;  %v807_v17 = vsub.f32 1.0, %v806_v13  ;;  %v1612_v38 = vperm.slane %v892_v5, 2 }
 0x17c   : > { %1175 = vrcp.f32 %v1582_v0  ;;  %v743_v9 = vsel %vm740_vm14, %v742_v14, %v738_v32  ;;  %vm811_vm15 = vweird.f32 %v1168_v59  ;;  %v844_v40 = vand.u32 2147483647, %v1565_v1 }
 0x17d   : > { %v1615_v44 = vadd.f32 1.0, %v1170_v63  ;;  %v882_v7 = vmul.f32 %v743_v9, %v1346_v43  ;;  %v1618_v45 = vpop.eup %1171  ;;  %v808_v46 = vmul.f32 %v1168_v59, %v807_v17  ;;  %v900_v47 = vmul.f32 %v1599_v34, %v880_v3  ;;  %vm1635_vm1 = vmor %vm810_vm12, %vm811_vm15 }
 0x17e   : > { %v901_v48 = vmul.f32 %v1601_v16, %v881_v21  ;;  %vm913_vm0 = vcmask 121856   ;;  %v836_v6 = vmul.f32 %v1618_v45, %v1565_v1  ;;  %v846_v52 = vand.u32 2147483648, %v1565_v1 }
 0x17f   : > { %v902_v54 = vmul.f32 %v1612_v38, %v882_v7  ;;  %v776_v51 = vmul.f32 %v1571_v25, %v1466_v26  ;;  %v809_v12 = vadd.f32 %v1168_v59, %v808_v46  ;;  %v859_v43 = vand.u32 2147483647, %v1593_v41 }
 0x180   : > { %v861_v2 = vand.u32 2147483648, %v1593_v41  ;;  %v912_v55 = vadd.f32 %v901_v48, %v900_v47  ;;  %v837_v39 = vsub.f32 1.0, %v836_v6  ;;  %vm855_vm2 = vweird.f32 %v1593_v41 }
 0x181   : > { %v1630_v61 = vpop.eup %1173  ;;  %1177 = vrcp.f32 %v1615_v44  ;;  %v914_v31 = vsel %vm913_vm0, %v902_v54, 0.0  ;;  %v777_v3 = vsub.f32 1.0, %v776_v51  ;;  %v813_v18 = vsel %vm1635_vm1, %v1168_v59, %v809_v12 }
 0x182   : > { %v1176_v4 = vpop.eup %1175  ;;  %v851_v57 = vmul.f32 %v1630_v61, %v1593_v41  ;;  %v915_v29 = vadd.f32 %v914_v31, %v912_v55  ;;  %v784_v56 = vand.u32 2147483647, %v1466_v26  ;;  %vm841_vm3 = vweird.f32 %v1618_v45 }
 0x183   : > { %v778_v58 = vmul.f32 %v1571_v25, %v777_v3  ;;  %vm780_vm4 = vweird.f32 %v1466_v26  ;;  %vm781_vm5 = vweird.f32 %v1571_v25  ;;  %v818_v23 = vsel %vm1606_vm13, %v817_v37, %v813_v18 }
 0x184   : > { %v838_v42 = vmul.f32 %v1618_v45, %v837_v39  ;;  %v852_v21 = vsub.f32 1.0, %v851_v57  ;;  %916 = vadd.xlane.f32.xlu2 %v915_v29  ;;  %v786_v22 = vand.u32 2147483648, %v1466_v26  ;;  %v903_v5 = vmul.f32 %v1599_v34, %v1578_v20  ;;  %vm782_vm7 = vmor %vm780_vm4, %vm781_vm5 }
 0x185   : > { %v779_v24 = vadd.f32 %v1571_v25, %v778_v58  ;;  %v904_v27 = vmul.f32 %v1601_v16, %v884_v28  ;;  %v821_v62 = vmul.f32 %v1176_v4, %v1582_v0  ;;  %vm856_vm6 = vweird.f32 %v1630_v61 }
 0x186   : > { %v853_v33 = vmul.f32 %v1630_v61, %v852_v21  ;;  %vm785_vm8 = vcmp.eq.f32.partialorder %v784_v56, 8.507059e+37  ;;  %v787_v19 = vor.u32 1.1754944e-38, %v786_v22  ;;  %v887_v30 = vmul.f32 %v818_v23, %v1405_v35  ;;  %vm1678_vm12 = vmor %vm855_vm2, %vm856_vm6 }
 0x187   : > { %v1178_v60 = vpop.eup %1177  ;;  %v783_v26 = vsel %vm782_vm7, %v1571_v25, %v779_v24  ;;  %v918_v59 = vadd.f32 %v904_v27, %v903_v5  ;;  %v822_v32 = vsub.f32 1.0, %v821_v62  ;;  %v839_v20 = vadd.f32 %v1618_v45, %v838_v42 }
 0x188   : > { %v854_v28 = vadd.f32 %v1630_v61, %v853_v33  ;;  %v788_v63 = vsel %vm785_vm8, %v787_v19, %v783_v26  ;;  %vm826_vm9 = vweird.f32 %v1176_v4  ;;  %v829_v53 = vand.u32 2147483647, %v1582_v0 }
 0x189   : > { %v885_v13 = vmul.f32 %v788_v63, %v1365_v11  ;;  %v823_v14 = vmul.f32 %v1176_v4, %v822_v32  ;;  %v831_v37 = vand.u32 2147483648, %v1582_v0  ;;  %vm840_vm10 = vweird.f32 %v1565_v1 }
 0x18a   : > { %vm1670_vm11 = vcmp.eq.f32.partialorder %v844_v40, 8.507059e+37  ;;  %v847_v25 = vor.u32 1.1754944e-38, %v846_v52  ;;  %vm860_vm13 = vcmp.eq.f32.partialorder %v859_v43, 8.507059e+37  ;;  %vm1684_vm14 = vmor %vm840_vm10, %vm841_vm3  ;;  %v858_v1 = vsel %vm1678_vm12, %v1630_v61, %v854_v28 }
 0x18b   : > { %v905_v9 = vmul.f32 %v1612_v38, %v885_v13  ;;  %v824_v40 = vadd.f32 %v1176_v4, %v823_v14  ;;  %vm825_vm15 = vweird.f32 %v1582_v0  ;;  %v843_v41 = vsel %vm1684_vm14, %v1618_v45, %v839_v20 }
 0x18c   : > { %v862_v7 = vor.u32 1.1754944e-38, %v861_v2  ;;  %vm827_vm1 = vmor %vm825_vm15, %vm826_vm9  ;;  %v832_v46 = vor.u32 1.1754944e-38, %v831_v37  ;;  %v866_v47 = vmul.f32 %v1178_v60, %v1615_v44  ;;  %vm830_vm2 = vcmp.eq.f32.partialorder %v829_v53, 8.507059e+37 }
 0x18d   : > { %v919_v48 = vsel %vm913_vm0, %v905_v9, 0.0  ;;  %v828_v6 = vsel %vm827_vm1, %v1176_v4, %v824_v40  ;;  %v907_v52 = vmul.f32 %v1601_v16, %v887_v30  ;;  %v848_v43 = vsel %vm1670_vm11, %v847_v25, %v843_v41 }
 0x18e   : > { %v863_v54 = vsel %vm860_vm13, %v862_v7, %v858_v1  ;;  %v920_v51 = vadd.f32 %v919_v48, %v918_v59  ;;  %v833_v12 = vsel %vm830_vm2, %v832_v46, %v828_v6  ;;  %v867_v0 = vsub.f32 1.0, %v866_v47 }
 0x18f   : > { %v888_v45 = vmul.f32 %v833_v12, %v1446_v8  ;;  %v876_v2 = vand.u32 2147483648, %v1615_v44  ;;  %v906_v55 = vmul.f32 %v1599_v34, %v1604_v36  ;;  %vm871_vm3 = vweird.f32 %v1178_v60 }
 0x190   : > { %921 = vadd.xlane.f32.xlu0 %v920_v51  ;;  %v868_v61 = vmul.f32 %v1178_v60, %v867_v0  ;;  %v874_v49 = vand.u32 2147483647, %v1615_v44  ;;  %v890_v39 = vmul.f32 %v863_v54, %v1492_v10  ;;  %vm870_vm4 = vweird.f32 %v1615_v44 }
 0x191   : > { %v908_v31 = vmul.f32 %v1612_v38, %v888_v45  ;;  %v923_v3 = vadd.f32 %v907_v52, %v906_v55  ;;  %v889_v8 = vmul.f32 %v848_v43, %v1448_v15  ;;  %vm872_vm5 = vmor %vm870_vm4, %vm871_vm3  ;;  %v877_v57 = vor.u32 1.1754944e-38, %v876_v2 }
 0x192   : > { %v869_v4 = vadd.f32 %v1178_v60, %v868_v61  ;;  %vm875_vm6 = vcmp.eq.f32.partialorder %v874_v49, 8.507059e+37  ;;  %v910_v58 = vmul.f32 %v1601_v16, %v890_v39  ;;  %vm941_vm7 = vcmask 3072  }
 0x193   : > { %v924_v18 = vsel %vm913_vm0, %v908_v31, 0.0  ;;  %v909_v23 = vmul.f32 %v1599_v34, %v889_v8 }
 0x194   : > { %v925_v36 = vadd.f32 %v924_v18, %v923_v3  ;;  %v873_v29 = vsel %vm872_vm5, %v1178_v60, %v869_v4 }
 0x195   : > { %v878_v56 = vsel %vm875_vm6, %v877_v57, %v873_v29  ;;  %v928_v42 = vadd.f32 %v910_v58, %v909_v23 }
 0x196   : > { %926 = vadd.xlane.f32.xlu1 %v925_v36  ;;  %v891_v10 = vmul.f32 %v878_v56, %v1508_v50 }
 0x198   : > { %v911_v44 = vmul.f32 %v1612_v38, %v891_v10 }
 0x19a   : > { %v929_v15 = vsel %vm913_vm0, %v911_v44, 0.0 }
 0x19b   : > { %v930_v21 = vadd.f32 %v929_v15, %v928_v42 }
 0x19d   : > { %931 = vadd.xlane.f32.xlu2 %v930_v21 }
 0x1f7   : > { %v917_v22 = vpop.xlane.xlu2 %916 }
 0x1f8   : > { %v933_v24 = vmul.f32 0.00390625, %v917_v22 }
 0x1fa   : > { %v937_v16 = vpack.c.bf16 %v933_v24, %v933_v24 }
 0x1fc   : > { %942 = vst.msk [vmem:[%s197_s29] sm:$0xf] %vm941_vm7, %v937_v16 }
 0x203   : > { %v922_v50 = vpop.xlane.xlu0 %921 }
 0x204   : > { %v934_v5 = vmul.f32 0.00390625, %v922_v50 }
 0x206   : > { %v938_v34 = vpack.c.bf16 %v934_v5, %v934_v5 }
 0x208   : > { %943 = vst.msk [vmem:[%s197_s29 + $0x4] sm:$0xf] %vm941_vm7, %v938_v34 }
 0x209   : > { %v927_v38 = vpop.xlane.xlu1 %926 }
 0x20a   : > { %v935_v27 = vmul.f32 0.00390625, %v927_v38 }
 0x20c   : > { %v939_v62 = vpack.c.bf16 %v935_v27, %v935_v27 }
 0x20e   : > { %944 = vst.msk [vmem:[%s197_s29 + $0x8] sm:$0xf] %vm941_vm7, %v939_v62 }
 0x210   : > { %v932_v33 = vpop.xlane.xlu2 %931 }
 0x211   : > { %v936_v19 = vmul.f32 0.00390625, %v932_v33 }
 0x213   : > { %v940_v60 = vpack.c.bf16 %v936_v19, %v936_v19 }
 0x215   : > { %945 = vst.msk [vmem:[%s197_s29 + $0xc] sm:$0xf] %vm941_vm7, %v940_v60 }
 0x216 PF: > { %s14_s15 = sadd.s32 1, %s1185_s15  }
 0x217   : > { %p11_p4 = scmp.ge.s32.totalorder %s14_s15, 4  }
 0x219   :  { %13 = sbr.rel (!%p11_p4) target bundleno = 1 (0x1), region = 69 }

// kernel: efficientnet_ifof_forward.3
= control target key start
LH: loop header
LB: loop body
LE: loop exit
PB: predicated region body
PF: predicated region fallthrough
CT: control target
= control target key end

     0   :  { %vm185_vm0 = vcmask 261120   ;;  %s3754_s0 = inlined_call_operand.vmem [shape: bf16[2,32], index: 0, kind: input, shape index: {}]   ;;  %s3755_s1 = inlined_call_operand.vmem [shape: bf16[2,768], index: 1, kind: input, shape index: {}]   ;;  %s3756_s2 = inlined_call_operand.vmem [shape: bf16[32,1280], index: 2, kind: input, shape index: {}]   ;;  %s3757_s3 = inlined_call_operand.vmem [shape: f32[1,1280], index: 3, kind: input, shape index: {}]   ;;  %s3758_s4 = inlined_call_operand.vmem [shape: bf16[1280,128], index: 4, kind: input, shape index: {}]   ;;  %s3759_s5 = inlined_call_operand.vmem [shape: bf16[768,128], index: 5, kind: input, shape index: {}]   ;;  %s3760_s6 = inlined_call_operand.vmem [shape: f32[1,128], index: 6, kind: input, shape index: {}]   ;;  %s3761_s7 = inlined_call_operand.vmem [shape: bf16[128,128], index: 7, kind: input, shape index: {}]   ;;  %s3762_s8 = inlined_call_operand.vmem [shape: f32[1,128], index: 8, kind: input, shape index: {}]   ;;  %s3763_s9 = inlined_call_operand.vmem [shape: bf16[128,128], index: 9, kind: input, shape index: {}]   ;;  %s3764_s10 = inlined_call_operand.vmem [shape: f32[1,128], index: 10, kind: input, shape index: {}]   ;;  %s3765_s11 = inlined_call_operand.hbm [shape: f32[2,128], index: 11, kind: output, shape index: {}]  }
   0x1   :  { %v2006_v0 = vld [vmem:[%s3756_s2 + $0x50] sm:$0xf]  ;;  %v2655_v1 = vld [vmem:[%s3756_s2 + $0x74] sm:$0xf0]  ;;  %v2650_v2 = vld [vmem:[%s3756_s2 + $0x54] sm:$0xf] }
   0x2   :  { %v2007_v3 = vor.u32 %v2655_v1, %v2006_v0  ;;  %v2008_v4 = vld [vmem:[%s3756_s2 + $0x78] sm:$0xf0]  ;;  %v2014_v5 = vld [vmem:[%s3756_s2 + $0x58] sm:$0xf]  ;;  %v2656_v6 = vld [vmem:[%s3756_s2 + $0x7c] sm:$0xf0] }
   0x3   :  { %v2011_v7 = vor.u32 %v2650_v2, %v2008_v4  ;;  %v2015_v8 = vor.u32 %v2656_v6, %v2014_v5  ;;  %v2651_v9 = vld [vmem:[%s3756_s2 + $0x5c] sm:$0xf]  ;;  %v2016_v10 = vld [vmem:[%s3756_s2 + $0x80] sm:$0xf0]  ;;  %v1966_v11 = vld [vmem:[%s3756_s2] sm:$0xf] }
   0x4   :  { %195 = vmatpush.bf16.msra.mxu0 %v2007_v3  ;;  %v2019_v12 = vor.u32 %v2651_v9, %v2016_v10  ;;  %v2645_v13 = vld [vmem:[%s3756_s2 + $0x24] sm:$0xf0]  ;;  %v2640_v14 = vld [vmem:[%s3756_s2 + $0x4] sm:$0xf]  ;;  %v1968_v15 = vld [vmem:[%s3756_s2 + $0x28] sm:$0xf0] }
   0x5   :  { %208 = vmatpush.bf16.msra.mxu1 %v2011_v7  ;;  %221 = vmatpush.bf16.msra.mxu2 %v2015_v8  ;;  %v1967_v16 = vor.u32 %v2645_v13, %v1966_v11  ;;  %v1971_v17 = vor.u32 %v2640_v14, %v1968_v15  ;;  %v1974_v18 = vld [vmem:[%s3756_s2 + $0x8] sm:$0xf]  ;;  %v2646_v19 = vld [vmem:[%s3756_s2 + $0x2c] sm:$0xf0]  ;;  %v2641_v20 = vld [vmem:[%s3756_s2 + $0xc] sm:$0xf] }
   0x6   :  { %234 = vmatpush.bf16.msra.mxu3 %v2019_v12  ;;  %v1975_v21 = vor.u32 %v2646_v19, %v1974_v18  ;;  %v1976_v22 = vld [vmem:[%s3756_s2 + $0x30] sm:$0xf0]  ;;  %v2986_v23 = vld [vmem:[%s3754_s0] sm:$0x1]  ;;  %v2657_v26 = vld [vmem:[%s3756_s2 + $0x84] sm:$0xf0] }
   0x7   :  { %v1979_v24 = vor.u32 %v2641_v20, %v1976_v22  ;;  %v2022_v25 = vld [vmem:[%s3756_s2 + $0x60] sm:$0xf]  ;;  %v2030_v27 = vld [vmem:[%s3756_s2 + $0x68] sm:$0xf]  ;;  %v2658_v29 = vld [vmem:[%s3756_s2 + $0x8c] sm:$0xf0] }
   0x8   :  { %196 = vmatpush.bf16.msra.mxu0 %v1967_v16  ;;  %v2023_v28 = vor.u32 %v2657_v26, %v2022_v25  ;;  %v2652_v30 = vld [vmem:[%s3756_s2 + $0x64] sm:$0xf]  ;;  %v2024_v31 = vld [vmem:[%s3756_s2 + $0x88] sm:$0xf0]  ;;  %v2031_v32 = vor.u32 %v2658_v29, %v2030_v27  ;;  %v2032_v35 = vld [vmem:[%s3756_s2 + $0x90] sm:$0xf0] }
   0x9   :  { %209 = vmatpush.bf16.msra.mxu1 %v1971_v17  ;;  %222 = vmatpush.bf16.msra.mxu2 %v1975_v21  ;;  %v2027_v33 = vor.u32 %v2652_v30, %v2024_v31  ;;  %v2653_v34 = vld [vmem:[%s3756_s2 + $0x6c] sm:$0xf]  ;;  %v1982_v36 = vld [vmem:[%s3756_s2 + $0x10] sm:$0xf]  ;;  %v2647_v38 = vld [vmem:[%s3756_s2 + $0x34] sm:$0xf0] }
   0xa   :  { %235 = vmatpush.bf16.msra.mxu3 %v1979_v24  ;;  %v2035_v37 = vor.u32 %v2653_v34, %v2032_v35  ;;  %v1990_v39 = vld [vmem:[%s3756_s2 + $0x18] sm:$0xf]  ;;  %v2648_v40 = vld [vmem:[%s3756_s2 + $0x3c] sm:$0xf0]  ;;  %v1983_v41 = vor.u32 %v2647_v38, %v1982_v36  ;;  %v2642_v43 = vld [vmem:[%s3756_s2 + $0x14] sm:$0xf] }
   0xb   :  { %2044 = vmatmul.msk.bf16.vlgmr.msra.gmra.mxu0 %vm185_vm0, %v2986_v23  ;;  %v1991_v42 = vor.u32 %v2648_v40, %v1990_v39  ;;  %v1984_v44 = vld [vmem:[%s3756_s2 + $0x38] sm:$0xf0]  ;;  %v1992_v46 = vld [vmem:[%s3756_s2 + $0x40] sm:$0xf0]  ;;  %v2038_v47 = vld [vmem:[%s3756_s2 + $0x70] sm:$0xf] }
   0xc   :  { %247 = vmatpush.bf16.msrb.mxu0 %v2023_v28  ;;  %v2643_v45 = vld [vmem:[%s3756_s2 + $0x1c] sm:$0xf]  ;;  %2045 = vmatmul.msk.bf16.vlgmr.msra.gmra.mxu1 %vm185_vm0, %v2986_v23  ;;  %v2659_v48 = vld [vmem:[%s3756_s2 + $0x94] sm:$0xf0]  ;;  %v1987_v49 = vor.u32 %v2642_v43, %v1984_v44  ;;  %v2654_v51 = vld [vmem:[%s3756_s2 + $0x74] sm:$0xf] }
   0xd   :  { %273 = vmatpush.bf16.msrb.mxu2 %v2031_v32  ;;  %2047 = vmatmul.msk.bf16.vlgmr.msra.gmra.mxu3 %vm185_vm0, %v2986_v23  ;;  %v2039_v50 = vor.u32 %v2659_v48, %v2038_v47  ;;  %v2040_v52 = vld [vmem:[%s3756_s2 + $0x98] sm:$0xf0]  ;;  %v1998_v53 = vld [vmem:[%s3756_s2 + $0x20] sm:$0xf]  ;;  %v1995_v54 = vor.u32 %v2643_v45, %v1992_v46  ;;  %v2649_v56 = vld [vmem:[%s3756_s2 + $0x44] sm:$0xf0] }
   0xe   :  { %2046 = vmatmul.msk.bf16.vlgmr.msra.gmra.mxu2 %vm185_vm0, %v2986_v23  ;;  %260 = vmatpush.bf16.msrb.mxu1 %v2027_v33  ;;  %v2043_v55 = vor.u32 %v2654_v51, %v2040_v52  ;;  %v2644_v57 = vld [vmem:[%s3756_s2 + $0x24] sm:$0xf]  ;;  %v1999_v58 = vor.u32 %v2649_v56, %v1998_v53  ;;  %v2000_v59 = vld [vmem:[%s3756_s2 + $0x48] sm:$0xf0]  ;;  %v2747_v60 = vld [vmem:[%s3759_s5 + $0x38] sm:$0xff] }
   0xf   :  { %286 = vmatpush.bf16.msrb.mxu3 %v2035_v37  ;;  %v2755_v61 = vld [vmem:[%s3759_s5 + $0x78] sm:$0xff]  ;;  %v2746_v62 = vld [vmem:[%s3759_s5 + $0x30] sm:$0xff]  ;;  %v2003_v63 = vor.u32 %v2644_v57, %v2000_v59  ;;  %v2745_v1 = vld [vmem:[%s3759_s5 + $0x28] sm:$0xff] }
  0x10   :  { %248 = vmatpush.bf16.msrb.mxu0 %v1983_v41  ;;  %v2754_v0 = vld [vmem:[%s3759_s5 + $0x70] sm:$0xff]  ;;  %v2753_v2 = vld [vmem:[%s3759_s5 + $0x68] sm:$0xff]  ;;  %v2763_v3 = vld [vmem:[%s3759_s5 + $0xb8] sm:$0xff] }
  0x11   :  { %274 = vmatpush.bf16.msrb.mxu2 %v1991_v42  ;;  %v2771_v4 = vld [vmem:[%s3759_s5 + $0xf8] sm:$0xff]  ;;  %v2744_v5 = vld [vmem:[%s3759_s5 + $0x20] sm:$0xff]  ;;  %v2762_v7 = vld [vmem:[%s3759_s5 + $0xb0] sm:$0xff] }
  0x12   :  { %261 = vmatpush.bf16.msrb.mxu1 %v1987_v49  ;;  %v2752_v6 = vld [vmem:[%s3759_s5 + $0x60] sm:$0xff]  ;;  %v2770_v8 = vld [vmem:[%s3759_s5 + $0xf0] sm:$0xff]  ;;  %v2743_v9 = vld [vmem:[%s3759_s5 + $0x18] sm:$0xff] }
  0x13   :  { %287 = vmatpush.bf16.msrb.mxu3 %v1995_v54 }
  0x14   :  { %299 = vmatpush.bf16.msra.mxu0 %v2039_v50 }
  0x15   :  { %1088 = vmatpush.bf16.msra.mxu2 %v2747_v60 }
  0x16   :  { %312 = vmatpush.bf16.msra.mxu1 %v2043_v55 }
  0x17   :  { %1101 = vmatpush.bf16.msra.mxu3 %v2755_v61 }
  0x18   :  { %300 = vmatpush.bf16.msra.mxu0 %v1999_v58 }
  0x19   :  { %1089 = vmatpush.bf16.msra.mxu2 %v2746_v62 }
  0x1a   :  { %313 = vmatpush.bf16.msra.mxu1 %v2003_v63 }
  0x1b   :  { %1102 = vmatpush.bf16.msra.mxu3 %v2754_v0  ;;  %2048 = vmatmul.msk.bf16.vlgmr.msrb.gmra.mxu0 %vm185_vm0, %v2986_v23 }
  0x1c   :  { %2049 = vmatmul.msk.bf16.vlgmr.msrb.gmra.mxu1 %vm185_vm0, %v2986_v23  ;;  %1114 = vmatpush.bf16.msrb.mxu0 %v2763_v3 }
  0x1d   :  { %1090 = vmatpush.bf16.msra.mxu2 %v2745_v1  ;;  %2051 = vmatmul.msk.bf16.vlgmr.msrb.gmra.mxu3 %vm185_vm0, %v2986_v23 }
  0x1e   :  { %2050 = vmatmul.msk.bf16.vlgmr.msrb.gmra.mxu2 %vm185_vm0, %v2986_v23  ;;  %1127 = vmatpush.bf16.msrb.mxu1 %v2771_v4 }
  0x1f   :  { %1103 = vmatpush.bf16.msra.mxu3 %v2753_v2 }
  0x21   :  { %1091 = vmatpush.bf16.msra.mxu2 %v2744_v5 }
  0x22   :  { %16 = vsyncpa [#allocation3], 0  ;;  %v2751_v10 = vld [vmem:[%s3759_s5 + $0x58] sm:$0xff]  ;;  %1115 = vmatpush.bf16.msrb.mxu0 %v2762_v7  ;;  %v2761_v11 = vld [vmem:[%s3759_s5 + $0xa8] sm:$0xff]  ;;  %1128 = vmatpush.bf16.msrb.mxu1 %v2770_v8  ;;  %s2874_s0 = smov [#allocation2]  }
  0x23   :  { %1104 = vmatpush.bf16.msra.mxu3 %v2752_v6  ;;  %v2769_v12 = vld [vmem:[%s3759_s5 + $0xe8] sm:$0xff]  ;;  %v2742_v13 = vld [vmem:[%s3759_s5 + $0x10] sm:$0xff]  ;;  %v689_v15 = vld [vmem:[%s3755_s1] sm:$0x3f]  ;;  %s1953_s21 = sshll.u32 %s2874_s0, 4  ;;  %s1954_s21 = int_to_ptr.vmem [resolvable:$true] %s1953_s21 }
  0x24   :  { %v2750_v14 = vld [vmem:[%s3759_s5 + $0x50] sm:$0xff]  ;;  %787 = vst [vmem:[#allocation1] ss:$9 sm:$0xff] %v689_v15  ;;  %v2760_v16 = vld [vmem:[%s3759_s5 + $0xa0] sm:$0xff]  ;;  %v2741_v18 = vld [vmem:[%s3759_s5 + $0x8] sm:$0xff] }
  0x25   :  { %1092 = vmatpush.bf16.msra.mxu2 %v2743_v9  ;;  %v2768_v17 = vld [vmem:[%s3759_s5 + $0xe0] sm:$0xff]  ;;  %v2749_v19 = vld [vmem:[%s3759_s5 + $0x48] sm:$0xff]  ;;  %v2759_v20 = vld [vmem:[%s3759_s5 + $0x98] sm:$0xff] }
  0x26   :  { %1116 = vmatpush.bf16.msrb.mxu0 %v2761_v11  ;;  %1129 = vmatpush.bf16.msrb.mxu1 %v2769_v12  ;;  %v2767_v21 = vld [vmem:[%s3759_s5 + $0xd8] sm:$0xff]  ;;  %v2740_v22 = vld [vmem:[%s3759_s5] sm:$0xff]  ;;  %v2758_v27 = vld [vmem:[%s3759_s5 + $0x90] sm:$0xff] }
  0x27   :  { %1105 = vmatpush.bf16.msra.mxu3 %v2751_v10  ;;  %v2748_v24 = vld [vmem:[%s3759_s5 + $0x40] sm:$0xff]  ;;  %v2779_v25 = vld [vmem:[%s3759_s5 + $0x138] sm:$0xff]  ;;  %v2766_v28 = vld [vmem:[%s3759_s5 + $0xd0] sm:$0xff] }
  0x28   :  { %v2787_v26 = vld [vmem:[%s3759_s5 + $0x178] sm:$0xff]  ;;  %v2786_v31 = vld [vmem:[%s3759_s5 + $0x170] sm:$0xff]  ;;  %v2757_v32 = vld [vmem:[%s3759_s5 + $0x88] sm:$0xff] }
  0x29   :  { %1093 = vmatpush.bf16.msra.mxu2 %v2742_v13  ;;  %v2765_v33 = vld [vmem:[%s3759_s5 + $0xc8] sm:$0xff]  ;;  %v2756_v36 = vld [vmem:[%s3759_s5 + $0x80] sm:$0xff]  ;;  %v2667_v38 = vld [vmem:[%s3758_s4 + $0x38] sm:$0xff] }
  0x2a   :  { %1117 = vmatpush.bf16.msrb.mxu0 %v2760_v16  ;;  %1130 = vmatpush.bf16.msrb.mxu1 %v2768_v17  ;;  %v2777_v34 = vld [vmem:[%s3759_s5 + $0x128] sm:$0xff]  ;;  %v2764_v37 = vld [vmem:[%s3759_s5 + $0xc0] sm:$0xff]  ;;  %v2675_v39 = vld [vmem:[%s3758_s4 + $0x78] sm:$0xff] }
  0x2b   :  { %1106 = vmatpush.bf16.msra.mxu3 %v2750_v14  ;;  %2052 = vmatmul.msk.bf16.vlgmr.msra.gmra.mxu0 %vm185_vm0, %v2986_v23  ;;  %v788_v29 = vld [vmem:[#allocation1] sm:$0xff]  ;;  %v789_v30 = vld [vmem:[#allocation1 + $0x9] sm:$0xff]  ;;  %v790_v42 = vld [vmem:[#allocation1 + $0x12] sm:$0xff] }
  0x2c   :  { %2053 = vmatmul.msk.bf16.vlgmr.msra.gmra.mxu1 %vm185_vm0, %v2986_v23  ;;  %v2778_v23 = vld [vmem:[%s3759_s5 + $0x130] sm:$0xff]  ;;  %v2785_v35 = vld [vmem:[%s3759_s5 + $0x168] sm:$0xff]  ;;  %v2776_v40 = vld [vmem:[%s3759_s5 + $0x120] sm:$0xff] }
  0x2d   :  { %1094 = vmatpush.bf16.msra.mxu2 %v2741_v18  ;;  %v2784_v41 = vld [vmem:[%s3759_s5 + $0x160] sm:$0xff]  ;;  %v2666_v43 = vld [vmem:[%s3758_s4 + $0x30] sm:$0xff]  ;;  %v2775_v45 = vld [vmem:[%s3759_s5 + $0x118] sm:$0xff] }
  0x2e   :  { %1118 = vmatpush.bf16.msrb.mxu0 %v2759_v20  ;;  %1131 = vmatpush.bf16.msrb.mxu1 %v2767_v21  ;;  %v2674_v44 = vld [vmem:[%s3758_s4 + $0x70] sm:$0xff]  ;;  %v2783_v46 = vld [vmem:[%s3759_s5 + $0x158] sm:$0xff]  ;;  %v2665_v47 = vld [vmem:[%s3758_s4 + $0x28] sm:$0xff] }
  0x2f   :  { %1107 = vmatpush.bf16.msra.mxu3 %v2749_v19  ;;  %v2673_v48 = vld [vmem:[%s3758_s4 + $0x68] sm:$0xff]  ;;  %v2774_v49 = vld [vmem:[%s3759_s5 + $0x110] sm:$0xff]  ;;  %v2664_v51 = vld [vmem:[%s3758_s4 + $0x20] sm:$0xff] }
  0x30   :  { %v2782_v50 = vld [vmem:[%s3759_s5 + $0x150] sm:$0xff]  ;;  %v2672_v52 = vld [vmem:[%s3758_s4 + $0x60] sm:$0xff]  ;;  %v2773_v53 = vld [vmem:[%s3759_s5 + $0x108] sm:$0xff] }
  0x31   :  { %1095 = vmatpush.bf16.msra.mxu2 %v2740_v22  ;;  %v2781_v54 = vld [vmem:[%s3759_s5 + $0x148] sm:$0xff]  ;;  %v2663_v55 = vld [vmem:[%s3758_s4 + $0x18] sm:$0xff]  ;;  %v2772_v57 = vld [vmem:[%s3759_s5 + $0x100] sm:$0xff] }
  0x32   :  { %1119 = vmatpush.bf16.msrb.mxu0 %v2758_v27  ;;  %1132 = vmatpush.bf16.msrb.mxu1 %v2766_v28  ;;  %v2671_v56 = vld [vmem:[%s3758_s4 + $0x58] sm:$0xff]  ;;  %v2780_v58 = vld [vmem:[%s3759_s5 + $0x140] sm:$0xff]  ;;  %v2662_v61 = vld [vmem:[%s3758_s4 + $0x10] sm:$0xff] }
  0x33   :  { %1108 = vmatpush.bf16.msra.mxu3 %v2748_v24  ;;  %v2683_v59 = vld [vmem:[%s3758_s4 + $0xb8] sm:$0xff]  ;;  %v2670_v62 = vld [vmem:[%s3758_s4 + $0x50] sm:$0xff]  ;;  %v2661_v2 = vld [vmem:[%s3758_s4 + $0x8] sm:$0xff] }
  0x34   :  { %1096 = vmatmul.bf16.vlgmr.msra.gmra.mxu2 %v788_v29  ;;  %v2691_v60 = vld [vmem:[%s3758_s4 + $0xf8] sm:$0xff]  ;;  %v2682_v63 = vld [vmem:[%s3758_s4 + $0xb0] sm:$0xff]  ;;  %v2669_v3 = vld [vmem:[%s3758_s4 + $0x48] sm:$0xff] }
  0x35   :  { %1140 = vmatpush.bf16.msrb.mxu2 %v2779_v25  ;;  %v2690_v0 = vld [vmem:[%s3758_s4 + $0xf0] sm:$0xff]  ;;  %v791_v1 = vld [vmem:[#allocation1 + $0x1b] sm:$0xff]  ;;  %v792_v4 = vld [vmem:[#allocation1 + $0x24] sm:$0xff] }
  0x36   :  { %1109 = vmatmul.bf16.vlgmr.msra.gmra.mxu3 %v789_v30  ;;  %1120 = vmatpush.bf16.msrb.mxu0 %v2757_v32  ;;  %v2681_v5 = vld [vmem:[%s3758_s4 + $0xa8] sm:$0xff]  ;;  %v2660_v8 = vld [vmem:[%s3758_s4] sm:$0xff]  ;;  %v2699_v10 = vld [vmem:[%s3758_s4 + $0x138] sm:$0xff] }
  0x37   :  { %1153 = vmatpush.bf16.msrb.mxu3 %v2787_v26  ;;  %1133 = vmatpush.bf16.msrb.mxu1 %v2765_v33  ;;  %v2689_v6 = vld [vmem:[%s3758_s4 + $0xe8] sm:$0xff]  ;;  %v2668_v9 = vld [vmem:[%s3758_s4 + $0x40] sm:$0xff]  ;;  %v2707_v11 = vld [vmem:[%s3758_s4 + $0x178] sm:$0xff] }
  0x38   :  { %v793_v7 = vld [vmem:[#allocation1 + $0x2d] sm:$0xff]  ;;  %v2680_v12 = vld [vmem:[%s3758_s4 + $0xa0] sm:$0xff]  ;;  %v2679_v16 = vld [vmem:[%s3758_s4 + $0x98] sm:$0xff] }
  0x39   :  { %1141 = vmatpush.bf16.msrb.mxu2 %v2778_v23  ;;  %v2688_v13 = vld [vmem:[%s3758_s4 + $0xe0] sm:$0xff]  ;;  %v2698_v14 = vld [vmem:[%s3758_s4 + $0x130] sm:$0xff]  ;;  %v2687_v17 = vld [vmem:[%s3758_s4 + $0xd8] sm:$0xff] }
  0x3a   :  { %1121 = vmatpush.bf16.msrb.mxu0 %v2756_v36  ;;  %v2706_v15 = vld [vmem:[%s3758_s4 + $0x170] sm:$0xff]  ;;  %v2697_v18 = vld [vmem:[%s3758_s4 + $0x128] sm:$0xff]  ;;  %v2696_v22 = vld [vmem:[%s3758_s4 + $0x120] sm:$0xff] }
  0x3b   :  { %1154 = vmatpush.bf16.msrb.mxu3 %v2786_v31  ;;  %1134 = vmatpush.bf16.msrb.mxu1 %v2764_v37  ;;  %v2705_v19 = vld [vmem:[%s3758_s4 + $0x168] sm:$0xff]  ;;  %v2678_v20 = vld [vmem:[%s3758_s4 + $0x90] sm:$0xff]  ;;  %v2704_v24 = vld [vmem:[%s3758_s4 + $0x160] sm:$0xff] }
  0x3c   :  { %v2686_v21 = vld [vmem:[%s3758_s4 + $0xd0] sm:$0xff]  ;;  %v2677_v25 = vld [vmem:[%s3758_s4 + $0x88] sm:$0xff]  ;;  %v3344_v27 = vld [vmem:[%s3757_s3] sm:$0xff] }
  0x3d   :  { %1142 = vmatpush.bf16.msrb.mxu2 %v2777_v34  ;;  %1122 = vmatmul.bf16.vlgmr.msrb.gmra.mxu0 %v790_v42  ;;  %v2685_v26 = vld [vmem:[%s3758_s4 + $0xc8] sm:$0xff]  ;;  %v2695_v28 = vld [vmem:[%s3758_s4 + $0x118] sm:$0xff]  ;;  %v65_v23 = vperm.slane %v3344_v27, 0  ;;  %v2676_v30 = vld [vmem:[%s3758_s4 + $0x80] sm:$0xff]  ;;  %v66_v32 = vperm.slane %v3344_v27, 1 }
  0x3e   :  { %1646 = vmatpush.bf16.msra.mxu0 %v2667_v38  ;;  %1135 = vmatmul.bf16.vlgmr.msrb.gmra.mxu1 %v791_v1  ;;  %v2703_v29 = vld [vmem:[%s3758_s4 + $0x158] sm:$0xff]  ;;  %v2684_v31 = vld [vmem:[%s3758_s4 + $0xc0] sm:$0xff]  ;;  %v2702_v36 = vld [vmem:[%s3758_s4 + $0x150] sm:$0xff] }
  0x3f   :  { %1155 = vmatpush.bf16.msrb.mxu3 %v2785_v35  ;;  %1659 = vmatpush.bf16.msra.mxu1 %v2675_v39  ;;  %v2715_v33 = vld [vmem:[%s3758_s4 + $0x1b8] sm:$0xff]  ;;  %v2694_v35 = vld [vmem:[%s3758_s4 + $0x110] sm:$0xff]  ;;  %v2692_v1 = vld [vmem:[%s3758_s4 + $0x100] sm:$0xff] }
  0x40   :  { %v2723_v34 = vld [vmem:[%s3758_s4 + $0x1f8] sm:$0xff]  ;;  %v2722_v42 = vld [vmem:[%s3758_s4 + $0x1f0] sm:$0xff] }
  0x41   :  { %1143 = vmatpush.bf16.msrb.mxu2 %v2776_v40 }
  0x42   :  { %1647 = vmatpush.bf16.msra.mxu0 %v2666_v43 }
  0x43   :  { %1156 = vmatpush.bf16.msrb.mxu3 %v2784_v41  ;;  %1660 = vmatpush.bf16.msra.mxu1 %v2674_v44  ;;  %v2714_v41 = vld [vmem:[%s3758_s4 + $0x1b0] sm:$0xff]  ;;  %v2693_v44 = vld [vmem:[%s3758_s4 + $0x108] sm:$0xff] }
  0x45   :  { %1144 = vmatpush.bf16.msrb.mxu2 %v2775_v45  ;;  %v2701_v45 = vld [vmem:[%s3758_s4 + $0x148] sm:$0xff] }
  0x46   :  { %1648 = vmatpush.bf16.msra.mxu0 %v2665_v47  ;;  %v67_v47 = vperm.slane %v3344_v27, 2 }
  0x47   :  { %1157 = vmatpush.bf16.msrb.mxu3 %v2783_v46  ;;  %1661 = vmatpush.bf16.msra.mxu1 %v2673_v48  ;;  %v68_v48 = vperm.slane %v3344_v27, 3 }
  0x49   :  { %1145 = vmatpush.bf16.msrb.mxu2 %v2774_v49 }
  0x4a   :  { %1649 = vmatpush.bf16.msra.mxu0 %v2664_v51 }
  0x4b   :  { %1158 = vmatpush.bf16.msrb.mxu3 %v2782_v50  ;;  %1662 = vmatpush.bf16.msra.mxu1 %v2672_v52 }
  0x4d   :  { %1146 = vmatpush.bf16.msrb.mxu2 %v2773_v53 }
  0x4e   :  { %1650 = vmatpush.bf16.msra.mxu0 %v2663_v55 }
  0x4f   :  { %1159 = vmatpush.bf16.msrb.mxu3 %v2781_v54  ;;  %1663 = vmatpush.bf16.msra.mxu1 %v2671_v56 }
  0x51   :  { %1147 = vmatpush.bf16.msrb.mxu2 %v2772_v57 }
  0x52   :  { %1651 = vmatpush.bf16.msra.mxu0 %v2662_v61  ;;  %v69_v61 = vperm.slane %v3344_v27, 4 }
  0x53   :  { %1160 = vmatpush.bf16.msrb.mxu3 %v2780_v58  ;;  %1664 = vmatpush.bf16.msra.mxu1 %v2670_v62  ;;  %v2713_v62 = vld [vmem:[%s3758_s4 + $0x1a8] sm:$0xff] }
  0x54   :  { %1148 = vmatmul.bf16.vlgmr.msrb.gmra.mxu2 %v792_v4 }
  0x55   :  { %1672 = vmatpush.bf16.msra.mxu2 %v2683_v59 }
  0x56   :  { %1652 = vmatpush.bf16.msra.mxu0 %v2661_v2  ;;  %1161 = vmatmul.bf16.vlgmr.msrb.gmra.mxu3 %v793_v7  ;;  %v2700_v2 = vld [vmem:[%s3758_s4 + $0x140] sm:$0xff] }
  0x57   :  { %1685 = vmatpush.bf16.msra.mxu3 %v2691_v60  ;;  %1665 = vmatpush.bf16.msra.mxu1 %v2669_v3 }
  0x59   :  { %1673 = vmatpush.bf16.msra.mxu2 %v2682_v63  ;;  %v2721_v63 = vld [vmem:[%s3758_s4 + $0x1e8] sm:$0xff] }
  0x5a   :  { %1653 = vmatpush.bf16.msra.mxu0 %v2660_v8  ;;  %v2712_v8 = vld [vmem:[%s3758_s4 + $0x1a0] sm:$0xff] }
  0x5b   :  { %1686 = vmatpush.bf16.msra.mxu3 %v2690_v0  ;;  %1666 = vmatpush.bf16.msra.mxu1 %v2668_v9  ;;  %v70_v0 = vperm.slane %v3344_v27, 5  ;;  %v2720_v9 = vld [vmem:[%s3758_s4 + $0x1e0] sm:$0xff] }
  0x5d   :  { %1674 = vmatpush.bf16.msra.mxu2 %v2681_v5 }
  0x5e   :  { %1698 = vmatpush.bf16.msrb.mxu0 %v2699_v10 }
  0x5f   :  { %1687 = vmatpush.bf16.msra.mxu3 %v2689_v6  ;;  %1711 = vmatpush.bf16.msrb.mxu1 %v2707_v11 }
  0x61   :  { %1675 = vmatpush.bf16.msra.mxu2 %v2680_v12 }
  0x62   :  { %1699 = vmatpush.bf16.msrb.mxu0 %v2698_v14  ;;  %v71_v14 = vperm.slane %v3344_v27, 6 }
  0x63   :  { %1688 = vmatpush.bf16.msra.mxu3 %v2688_v13  ;;  %1712 = vmatpush.bf16.msrb.mxu1 %v2706_v15  ;;  %v3434_v15 = vld [vmem:[%s3757_s3 + $0x8] sm:$0x3] }
  0x65   :  { %1676 = vmatpush.bf16.msra.mxu2 %v2679_v16 }
  0x66   :  { %1700 = vmatpush.bf16.msrb.mxu0 %v2697_v18 }
  0x67   :  { %1689 = vmatpush.bf16.msra.mxu3 %v2687_v17  ;;  %1713 = vmatpush.bf16.msrb.mxu1 %v2705_v19 }
  0x69   :  { %1677 = vmatpush.bf16.msra.mxu2 %v2678_v20 }
  0x6a   :  { %1701 = vmatpush.bf16.msrb.mxu0 %v2696_v22 }
  0x6b   :  { %1690 = vmatpush.bf16.msra.mxu3 %v2686_v21  ;;  %1714 = vmatpush.bf16.msrb.mxu1 %v2704_v24 }
  0x6d   :  { %1678 = vmatpush.bf16.msra.mxu2 %v2677_v25  ;;  %v72_v25 = vperm.slane %v3344_v27, 7 }
  0x6e   :  { %1702 = vmatpush.bf16.msrb.mxu0 %v2695_v28  ;;  %v2719_v28 = vld [vmem:[%s3758_s4 + $0x1d8] sm:$0xff] }
  0x6f   :  { %1691 = vmatpush.bf16.msra.mxu3 %v2685_v26  ;;  %1715 = vmatpush.bf16.msrb.mxu1 %v2703_v29  ;;  %v2711_v26 = vld [vmem:[%s3758_s4 + $0x198] sm:$0xff] }
  0x71   :  { %1679 = vmatpush.bf16.msra.mxu2 %v2676_v30  ;;  %v73_v30 = vperm.slane %v3434_v15, 0 }
  0x72   :  { %1703 = vmatpush.bf16.msrb.mxu0 %v2694_v35 }
  0x73   :  { %1692 = vmatpush.bf16.msra.mxu3 %v2684_v31  ;;  %1716 = vmatpush.bf16.msrb.mxu1 %v2702_v36 }
  0x75   :  { %1724 = vmatpush.bf16.msrb.mxu2 %v2715_v33 }
  0x76   :  { %1704 = vmatpush.bf16.msrb.mxu0 %v2693_v44  ;;  %v2710_v44 = vld [vmem:[%s3758_s4 + $0x190] sm:$0xff] }
  0x77   :  { %1737 = vmatpush.bf16.msrb.mxu3 %v2723_v34  ;;  %1717 = vmatpush.bf16.msrb.mxu1 %v2701_v45  ;;  %v2718_v45 = vld [vmem:[%s3758_s4 + $0x1d0] sm:$0xff] }
  0x79   :  { %1725 = vmatpush.bf16.msrb.mxu2 %v2714_v41 }
  0x7a   :  { %1705 = vmatpush.bf16.msrb.mxu0 %v2692_v1 }
  0x7b   :  { %1738 = vmatpush.bf16.msrb.mxu3 %v2722_v42  ;;  %1718 = vmatpush.bf16.msrb.mxu1 %v2700_v2 }
  0x7d   :  { %1726 = vmatpush.bf16.msrb.mxu2 %v2713_v62 }
  0x7f   :  { %1739 = vmatpush.bf16.msrb.mxu3 %v2721_v63  ;;  %v2709_v63 = vld [vmem:[%s3758_s4 + $0x188] sm:$0xff] }
  0x81   :  { %1727 = vmatpush.bf16.msrb.mxu2 %v2712_v8 }
  0x83   :  { %1740 = vmatpush.bf16.msrb.mxu3 %v2720_v9 }
  0x85   :  { %1728 = vmatpush.bf16.msrb.mxu2 %v2711_v26  ;;  %v2716_v26 = vld [vmem:[%s3758_s4 + $0x1c0] sm:$0xff] }
  0x87   :  { %1741 = vmatpush.bf16.msrb.mxu3 %v2719_v28 }
  0x88   :  { %v198_v37 = vpop.f32.mrf.mxu0 }
  0x89   :  { %v3372_v38 = vadd.f32 %v198_v37, %v65_v23  ;;  %v211_v39 = vpop.f32.mrf.mxu1  ;;  %1729 = vmatpush.bf16.msrb.mxu2 %v2710_v44 }
  0x8a   :  { %v3374_v40 = vadd.f32 %v211_v39, %v66_v32 }
  0x8b   :  { %v2054_v43 = vmul.f32 -1.442695, %v3372_v38  ;;  %1742 = vmatpush.bf16.msrb.mxu3 %v2718_v45 }
  0x8c   :  { %v2055_v46 = vmul.f32 -1.442695, %v3374_v40 }
  0x8d   :  { %2808 = vpow2.f32 %v2054_v43  ;;  %1730 = vmatpush.bf16.msrb.mxu2 %v2709_v63 }
  0x8e   :  { %2810 = vpow2.f32 %v2055_v46 }
  0x90   :  { %v237_v51 = vpop.f32.mrf.mxu3  ;;  %v200_v52 = vpop.f32.mrf.mxu0 }
  0x91   :  { %v224_v49 = vpop.f32.mrf.mxu2  ;;  %v3394_v53 = vadd.f32 %v237_v51, %v68_v48  ;;  %v213_v54 = vpop.f32.mrf.mxu1 }
  0x92   :  { %v3392_v50 = vadd.f32 %v224_v49, %v67_v47 }
  0x93   :  { %v2809_v56 = vpop.eup %2808  ;;  %v2057_v57 = vmul.f32 -1.442695, %v3394_v53 }
  0x94   :  { %v2056_v55 = vmul.f32 -1.442695, %v3392_v50  ;;  %v2811_v58 = vpop.eup %2810  ;;  %v3398_v59 = vadd.f32 1.0, %v2809_v56 }
  0x95   :  { %v3400_v60 = vadd.f32 1.0, %v2811_v58 }
  0x96   :  { %2812 = vpow2.f32 %v2056_v55  ;;  %v368_v17 = vand.u32 2147483647, %v3398_v59  ;;  %v370_v18 = vand.u32 2147483648, %v3398_v59  ;;  %vm364_vm1 = vweird.f32 %v3398_v59 }
  0x97   :  { %2814 = vpow2.f32 %v2057_v57  ;;  %v383_v19 = vand.u32 2147483647, %v3400_v60  ;;  %vm379_vm2 = vweird.f32 %v3400_v60  ;;  %v385_v27 = vand.u32 2147483648, %v3400_v60 }
  0x98   :  { %2816 = vrcp.f32 %v3398_v59  ;;  %v239_v4 = vpop.f32.mrf.mxu3  ;;  %v250_v5 = vpop.f32.mrf.mxu0  ;;  %vm3461_vm3 = vcmp.eq.f32.partialorder %v368_v17, 8.507059e+37  ;;  %v371_v34 = vor.u32 1.1754944e-38, %v370_v18 }
  0x99   :  { %2818 = vrcp.f32 %v3400_v60  ;;  %v226_v3 = vpop.f32.mrf.mxu2  ;;  %v3418_v6 = vadd.f32 %v250_v5, %v69_v61  ;;  %v263_v7 = vpop.f32.mrf.mxu1  ;;  %vm3465_vm4 = vcmp.eq.f32.partialorder %v383_v19, 8.507059e+37  ;;  %v386_v51 = vor.u32 1.1754944e-38, %v385_v27 }
  0x9a   :  { %v3426_v11 = vadd.f32 %v263_v7, %v70_v0  ;;  %v2717_v0 = vld [vmem:[%s3758_s4 + $0x1c8] sm:$0xff] }
  0x9b   :  { %v2058_v24 = vmul.f32 -1.442695, %v3418_v6  ;;  %1743 = vmatpush.bf16.msrb.mxu3 %v2717_v0 }
  0x9c   :  { %v2813_v10 = vpop.eup %2812  ;;  %v2059_v23 = vmul.f32 -1.442695, %v3426_v11 }
  0x9d   :  { %v2815_v12 = vpop.eup %2814  ;;  %v3428_v13 = vadd.f32 1.0, %v2813_v10 }
  0x9e   :  { %v2817_v16 = vpop.eup %2816  ;;  %v3439_v20 = vadd.f32 1.0, %v2815_v12 }
  0x9f   :  { %v3441_v21 = vpop.eup %2818  ;;  %v360_v22 = vmul.f32 %v2817_v16, %v3398_v59  ;;  %2820 = vrcp.f32 %v3428_v13  ;;  %vm365_vm5 = vweird.f32 %v2817_v16  ;;  %vm394_vm7 = vweird.f32 %v3428_v13  ;;  %1744 = vmatpush.bf16.msrb.mxu3 %v2716_v26 }
  0xa0   :  { %v375_v29 = vmul.f32 %v3441_v21, %v3400_v60  ;;  %2822 = vrcp.f32 %v3439_v20  ;;  %v289_v37 = vpop.f32.mrf.mxu3  ;;  %v252_v39 = vpop.f32.mrf.mxu0  ;;  %vm380_vm6 = vweird.f32 %v3441_v21  ;;  %vm366_vm8 = vmor %vm364_vm1, %vm365_vm5  ;;  %v398_v56 = vand.u32 2147483647, %v3428_v13 }
  0xa1   :  { %v361_v31 = vsub.f32 1.0, %v360_v22  ;;  %v276_v32 = vpop.f32.mrf.mxu2  ;;  %2824 = vpow2.f32 %v2058_v24  ;;  %v265_v43 = vpop.f32.mrf.mxu1  ;;  %v3479_v47 = vadd.f32 %v289_v37, %v72_v25  ;;  %vm381_vm9 = vmor %vm379_vm2, %vm380_vm6  ;;  %v400_v59 = vand.u32 2147483648, %v3428_v13  ;;  %v2708_v25 = vld [vmem:[%s3758_s4 + $0x180] sm:$0xff]  ;;  %v2738_v37 = vld [vmem:[%s3758_s4 + $0x270] sm:$0xff] }
  0xa2   :  { %v376_v35 = vsub.f32 1.0, %v375_v29  ;;  %v3469_v42 = vadd.f32 %v276_v32, %v71_v14  ;;  %2826 = vpow2.f32 %v2059_v23  ;;  %v413_v62 = vand.u32 2147483647, %v3439_v20  ;;  %1731 = vmatpush.bf16.msrb.mxu2 %v2708_v25  ;;  %v2727_v25 = vld [vmem:[%s3758_s4 + $0x218] sm:$0xff] }
  0xa3   :  { %v362_v41 = vmul.f32 %v2817_v16, %v361_v31  ;;  %v2061_v57 = vmul.f32 -1.442695, %v3479_v47  ;;  %v401_v27 = vor.u32 1.1754944e-38, %v400_v59  ;;  %vm409_vm13 = vweird.f32 %v3439_v20 }
  0xa4   :  { %v377_v46 = vmul.f32 %v3441_v21, %v376_v35  ;;  %v2060_v52 = vmul.f32 -1.442695, %v3469_v42  ;;  %vm399_vm14 = vcmp.eq.f32.partialorder %v398_v56, 8.507059e+37  ;;  %vm414_vm0 = vcmp.eq.f32.partialorder %v413_v62, 8.507059e+37 }
  0xa5   :  { %v3481_v48 = vpop.eup %2820  ;;  %v363_v49 = vadd.f32 %v2817_v16, %v362_v41 }
  0xa6   :  { %v378_v54 = vadd.f32 %v3441_v21, %v377_v46  ;;  %v390_v55 = vmul.f32 %v3481_v48, %v3428_v13  ;;  %v3493_v58 = vpop.eup %2822  ;;  %2828 = vpow2.f32 %v2060_v52  ;;  %vm395_vm10 = vweird.f32 %v3481_v48  ;;  %v2730_v13 = vld [vmem:[%s3758_s4 + $0x230] sm:$0xff]  ;;  %v2729_v52 = vld [vmem:[%s3758_s4 + $0x228] sm:$0xff] }
  0xa7   :  { %v367_v61 = vsel %vm366_vm8, %v2817_v16, %v363_v49  ;;  %v405_v3 = vmul.f32 %v3493_v58, %v3439_v20  ;;  %v2825_v4 = vpop.eup %2824  ;;  %2830 = vpow2.f32 %v2061_v57  ;;  %vm410_vm11 = vweird.f32 %v3493_v58  ;;  %vm396_vm12 = vmor %vm394_vm7, %vm395_vm10 }
  0xa8   :  { %v372_v1 = vsel %vm3461_vm3, %v371_v34, %v367_v61  ;;  %v382_v2 = vsel %vm381_vm9, %v3441_v21, %v378_v54  ;;  %v391_v60 = vsub.f32 1.0, %v390_v55  ;;  %v2827_v9 = vpop.eup %2826  ;;  %v3518_v16 = vadd.f32 1.0, %v2825_v4  ;;  %v291_v17 = vpop.f32.mrf.mxu3  ;;  %vm411_vm15 = vmor %vm409_vm13, %vm410_vm11  ;;  %v2737_v61 = vld [vmem:[%s3758_s4 + $0x268] sm:$0xff] }
  0xa9   :  { %v509_v5 = vmul.f32 %v372_v1, %v3372_v38  ;;  %v387_v7 = vsel %vm3465_vm4, %v386_v51, %v382_v2  ;;  %v278_v8 = vpop.f32.mrf.mxu2  ;;  %v406_v14 = vsub.f32 1.0, %v405_v3  ;;  %v302_v18 = vpop.f32.mrf.mxu0  ;;  %v2731_v38 = vld [vmem:[%s3758_s4 + $0x238] sm:$0xff]  ;;  %v415_v21 = vand.u32 2147483648, %v3439_v20  ;;  %v2728_v2 = vld [vmem:[%s3758_s4 + $0x220] sm:$0xff] }
  0xaa   :  { %v510_v10 = vmul.f32 %v387_v7, %v3374_v40  ;;  %v392_v12 = vmul.f32 %v3481_v48, %v391_v60  ;;  %v3525_v22 = vadd.f32 1.0, %v2827_v9  ;;  %v3527_v24 = vpop.f32.mrf.mxu1  ;;  %v2739_v40 = vld [vmem:[%s3758_s4 + $0x278] sm:$0xff]  ;;  %2832 = vrcp.f32 %v3518_v16 }
  0xab   :  { %v519_v19 = vpack.c.bf16 %v509_v5, %v509_v5  ;;  %v407_v23 = vmul.f32 %v3493_v58, %v406_v14  ;;  %v3551_v34 = vadd.f32 %v302_v18, %v73_v30  ;;  %v416_v36 = vor.u32 1.1754944e-38, %v415_v21  ;;  %v2736_v5 = vld [vmem:[%s3758_s4 + $0x260] sm:$0xff] }
  0xac   :  { %v520_v28 = vpack.c.bf16 %v510_v10, %v510_v10  ;;  %v393_v29 = vadd.f32 %v3481_v48, %v392_v12  ;;  %v2829_v31 = vpop.eup %2828  ;;  %2834 = vrcp.f32 %v3525_v22  ;;  %v428_v44 = vand.u32 2147483647, %v3518_v16 }
  0xad   :  { %1654 = vmatmul.bf16.vlgmr.msra.gmra.mxu0 %v519_v19  ;;  %v408_v33 = vadd.f32 %v3493_v58, %v407_v23  ;;  %v2831_v20 = vpop.eup %2830  ;;  %v3563_v41 = vadd.f32 1.0, %v2829_v31  ;;  %v2062_v51 = vmul.f32 -1.442695, %v3551_v34  ;;  %v430_v56 = vand.u32 2147483648, %v3518_v16  ;;  %v2735_v31 = vld [vmem:[%s3758_s4 + $0x258] sm:$0xff] }
  0xae   :  { %v397_v32 = vsel %vm396_vm12, %v3481_v48, %v393_v29  ;;  %1667 = vmatmul.bf16.vlgmr.msra.gmra.mxu1 %v520_v28  ;;  %1750 = vmatpush.bf16.msra.mxu0 %v2731_v38  ;;  %v3566_v45 = vadd.f32 1.0, %v2831_v20  ;;  %v443_v57 = vand.u32 2147483647, %v3525_v22  ;;  %v445_v63 = vand.u32 2147483648, %v3525_v22 }
  0xaf   :  { %v402_v35 = vsel %vm399_vm14, %v401_v27, %v397_v32  ;;  %1763 = vmatpush.bf16.msra.mxu1 %v2739_v40  ;;  %v412_v39 = vsel %vm411_vm15, %v3493_v58, %v408_v33  ;;  %2836 = vrcp.f32 %v3563_v41  ;;  %vm424_vm1 = vweird.f32 %v3518_v16 }
  0xb0   :  { %v511_v30 = vmul.f32 %v402_v35, %v3392_v50  ;;  %v417_v43 = vsel %vm414_vm0, %v416_v36, %v412_v39  ;;  %v3568_v46 = vpop.eup %2832  ;;  %2838 = vrcp.f32 %v3566_v45  ;;  %vm3591_vm2 = vcmp.eq.f32.partialorder %v428_v44, 8.507059e+37  ;;  %v2726_v44 = vld [vmem:[%s3758_s4 + $0x210] sm:$0xff] }
  0xb1   :  { %v512_v49 = vmul.f32 %v417_v43, %v3394_v53  ;;  %v304_v50 = vpop.f32.mrf.mxu0  ;;  %v420_v55 = vmul.f32 %v3568_v46, %v3518_v16  ;;  %v74_v53 = vperm.slane %v3434_v15, 1  ;;  %vm439_vm3 = vweird.f32 %v3525_v22 }
  0xb2   :  { %v521_v48 = vpack.c.bf16 %v511_v30, %v511_v30  ;;  %1751 = vmatpush.bf16.msra.mxu0 %v2730_v13  ;;  %v3576_v54 = vpop.eup %2834  ;;  %v317_v58 = vpop.f32.mrf.mxu1  ;;  %2840 = vpow2.f32 %v2062_v51  ;;  %vm425_vm4 = vweird.f32 %v3568_v46  ;;  %v431_v3 = vor.u32 1.1754944e-38, %v430_v56 }
  0xb3   :  { %1764 = vmatpush.bf16.msra.mxu1 %v2738_v37  ;;  %v522_v59 = vpack.c.bf16 %v512_v49, %v512_v49  ;;  %v435_v62 = vmul.f32 %v3576_v54, %v3525_v22  ;;  %v421_v0 = vsub.f32 1.0, %v420_v55  ;;  %v3602_v4 = vadd.f32 %v3527_v24, %v74_v53  ;;  %vm3623_vm8 = vmor %vm424_vm1, %vm425_vm4 }
  0xb4   :  { %1680 = vmatmul.bf16.vlgmr.msra.gmra.mxu2 %v521_v48  ;;  %vm440_vm5 = vweird.f32 %v3576_v54  ;;  %vm3609_vm6 = vcmp.eq.f32.partialorder %v443_v57, 8.507059e+37  ;;  %v446_v10 = vor.u32 1.1754944e-38, %v445_v63  ;;  %vm454_vm7 = vweird.f32 %v3563_v41 }
  0xb5   :  { %v436_v1 = vsub.f32 1.0, %v435_v62  ;;  %1693 = vmatmul.bf16.vlgmr.msra.gmra.mxu3 %v522_v59  ;;  %v422_v60 = vmul.f32 %v3568_v46, %v421_v0  ;;  %v2837_v7 = vpop.eup %2836  ;;  %v2063_v17 = vmul.f32 -1.442695, %v3602_v4  ;;  %v458_v21 = vand.u32 2147483647, %v3563_v41  ;;  %vm441_vm9 = vmor %vm439_vm3, %vm440_vm5 }
  0xb6   :  { %1752 = vmatpush.bf16.msra.mxu0 %v2729_v52  ;;  %v450_v14 = vmul.f32 %v2837_v7, %v3563_v41  ;;  %v3617_v18 = vpop.eup %2838  ;;  %v460_v24 = vand.u32 2147483648, %v3563_v41  ;;  %v473_v40 = vand.u32 2147483647, %v3566_v45  ;;  %vm455_vm10 = vweird.f32 %v2837_v7  ;;  %v2725_v41 = vld [vmem:[%s3758_s4 + $0x208] sm:$0xff] }
  0xb7   :  { %1765 = vmatpush.bf16.msra.mxu1 %v2737_v61  ;;  %v437_v8 = vmul.f32 %v3576_v54, %v436_v1  ;;  %v423_v12 = vadd.f32 %v3568_v46, %v422_v60  ;;  %v1097_v26 = vpop.f32.mrf.mxu2  ;;  %v465_v23 = vmul.f32 %v3617_v18, %v3566_v45  ;;  %2842 = vpow2.f32 %v2063_v17  ;;  %vm456_vm12 = vmor %vm454_vm7, %vm455_vm10 }
  0xb8   :  { %v451_v29 = vsub.f32 1.0, %v450_v14  ;;  %v2841_v32 = vpop.eup %2840  ;;  %v475_v39 = vand.u32 2147483648, %v3566_v45  ;;  %vm470_vm11 = vweird.f32 %v3617_v18  ;;  %v461_v50 = vor.u32 1.1754944e-38, %v460_v24 }
  0xb9   :  { %v438_v19 = vadd.f32 %v3576_v54, %v437_v8  ;;  %v1110_v28 = vpop.f32.mrf.mxu3  ;;  %v427_v16 = vsel %vm3623_vm8, %v3568_v46, %v423_v12  ;;  %v466_v37 = vsub.f32 1.0, %v465_v23  ;;  %v3654_v43 = vadd.f32 1.0, %v2841_v32 }
  0xba   :  { %1753 = vmatpush.bf16.msra.mxu0 %v2728_v2  ;;  %v1123_v27 = vpop.f32.mrf.mxu0  ;;  %v432_v33 = vsel %vm3591_vm2, %v431_v3, %v427_v16  ;;  %v1111_v22 = vadd.f32 %v1110_v28, %v1097_v26  ;;  %v452_v36 = vmul.f32 %v2837_v7, %v451_v29  ;;  %vm459_vm13 = vcmp.eq.f32.partialorder %v458_v21, 8.507059e+37 }
  0xbb   :  { %1766 = vmatpush.bf16.msra.mxu1 %v2736_v5  ;;  %v442_v13 = vsel %vm441_vm9, %v3576_v54, %v438_v19  ;;  %v513_v20 = vmul.f32 %v432_v33, %v3418_v6  ;;  %v467_v49 = vmul.f32 %v3617_v18, %v466_v37  ;;  %2844 = vrcp.f32 %v3654_v43  ;;  %v2732_v5 = vld [vmem:[%s3758_s4 + $0x240] sm:$0xff]  ;;  %v1136_v32 = vpop.f32.mrf.mxu1 }
  0xbc   :  { %v447_v35 = vsel %vm3609_vm6, %v446_v10, %v442_v13  ;;  %v3659_v46 = vadd.f32 %v1123_v27, %v1111_v22  ;;  %v453_v6 = vadd.f32 %v2837_v7, %v452_v36  ;;  %vm469_vm14 = vweird.f32 %v3566_v45  ;;  %v2733_v45 = vld [vmem:[%s3758_s4 + $0x248] sm:$0xff] }
  0xbd   :  { %v514_v30 = vmul.f32 %v447_v35, %v3426_v11  ;;  %v523_v48 = vpack.c.bf16 %v513_v20, %v513_v20  ;;  %v2734_v11 = vld [vmem:[%s3758_s4 + $0x250] sm:$0xff]  ;;  %v468_v54 = vadd.f32 %v3617_v18, %v467_v49  ;;  %v2843_v55 = vpop.eup %2842  ;;  %vm471_vm15 = vmor %vm469_vm14, %vm470_vm11  ;;  %v476_v57 = vor.u32 1.1754944e-38, %v475_v39  ;;  %v2793_v39 = vld [vmem:[%s3761_s7 + $0x28] sm:$0xff] }
  0xbe   :  { %1754 = vmatpush.bf16.msra.mxu0 %v2727_v25  ;;  %v457_v52 = vsel %vm456_vm12, %v2837_v7, %v453_v6  ;;  %vm474_vm0 = vcmp.eq.f32.partialorder %v473_v40, 8.507059e+37  ;;  %v358_v62 = vadd.f32 1.0, %v2843_v55  ;;  %v488_v10 = vand.u32 2147483647, %v3654_v43 }
  0xbf   :  { %1767 = vmatpush.bf16.msra.mxu1 %v2735_v31  ;;  %v524_v51 = vpack.c.bf16 %v514_v30, %v514_v30  ;;  %1706 = vmatmul.bf16.vlgmr.msrb.gmra.mxu0 %v523_v48  ;;  %v462_v56 = vsel %vm459_vm13, %v461_v50, %v457_v52  ;;  %v1099_v53 = vpop.f32.mrf.mxu2  ;;  %v472_v59 = vsel %vm471_vm15, %v3617_v18, %v468_v54  ;;  %vm484_vm2 = vweird.f32 %v3654_v43  ;;  %v2795_v30 = vld [vmem:[%s3761_s7 + $0x38] sm:$0xff]  ;;  %v2789_v54 = vld [vmem:[%s3761_s7 + $0x8] sm:$0xff] }
  0xc0   :  { %v515_v61 = vmul.f32 %v462_v56, %v3469_v42  ;;  %v477_v0 = vsel %vm474_vm0, %v476_v57, %v472_v59  ;;  %2846 = vrcp.f32 %v358_v62  ;;  %v2724_v42 = vld [vmem:[%s3758_s4 + $0x200] sm:$0xff]  ;;  %vm489_vm4 = vcmp.eq.f32.partialorder %v488_v10, 8.507059e+37  ;;  %1851 = vmatpush.bf16.msra.mxu2 %v2795_v30  ;;  %v2791_v48 = vld [vmem:[%s3761_s7 + $0x18] sm:$0xff]  ;;  %v2798_v10 = vld [vmem:[%s3763_s9 + $0x10] sm:$0xff] }
  0xc1   :  { %1719 = vmatmul.bf16.vlgmr.msrb.gmra.mxu1 %v524_v51  ;;  %v1112_v58 = vpop.f32.mrf.mxu3  ;;  %v516_v1 = vmul.f32 %v477_v0, %v3479_v47  ;;  %v2845_v2 = vpop.eup %2844  ;;  %v490_v47 = vand.u32 2147483648, %v3654_v43  ;;  %v505_v19 = vand.u32 2147483648, %v358_v62  ;;  %v503_v40 = vand.u32 2147483647, %v358_v62  ;;  %v2788_v56 = vld [vmem:[%s3761_s7] sm:$0xff] }
  0xc2   :  { %1755 = vmatpush.bf16.msra.mxu0 %v2726_v44  ;;  %v1125_v63 = vpop.f32.mrf.mxu0  ;;  %v525_v15 = vpack.c.bf16 %v515_v61, %v515_v61  ;;  %v480_v3 = vmul.f32 %v2845_v2, %v3654_v43  ;;  %vm485_vm1 = vweird.f32 %v2845_v2  ;;  %vm499_vm6 = vweird.f32 %v358_v62  ;;  %v2792_v43 = vld [vmem:[%s3761_s7 + $0x20] sm:$0xff]  ;;  %v2803_v61 = vld [vmem:[%s3763_s9 + $0x38] sm:$0xff] }
  0xc3   :  { %1768 = vmatpush.bf16.msra.mxu1 %v2734_v11  ;;  %v526_v60 = vpack.c.bf16 %v516_v1, %v516_v1  ;;  %vm486_vm3 = vmor %vm484_vm2, %vm485_vm1  ;;  %v491_v17 = vor.u32 1.1754944e-38, %v490_v47  ;;  %v506_v16 = vor.u32 1.1754944e-38, %v505_v19  ;;  %vm504_vm8 = vcmp.eq.f32.partialorder %v503_v40, 8.507059e+37  ;;  %v1138_v13 = vpop.f32.mrf.mxu1  ;;  %v2790_v11 = vld [vmem:[%s3761_s7 + $0x10] sm:$0xff]  ;;  %1934 = vmatpush.bf16.msra.mxu3 %v2803_v61 }
  0xc4   :  { %1732 = vmatmul.bf16.vlgmr.msrb.gmra.mxu2 %v525_v15  ;;  %v481_v7 = vsub.f32 1.0, %v480_v3  ;;  %v1137_v33 = vadd.f32 %v1136_v32, %v3659_v46  ;;  %v2801_v15 = vld [vmem:[%s3763_s9 + $0x28] sm:$0xff] }
  0xc5   :  { %1745 = vmatmul.bf16.vlgmr.msrb.gmra.mxu3 %v526_v60  ;;  %v2800_v60 = vld [vmem:[%s3763_s9 + $0x20] sm:$0xff] }
  0xc6   :  { %1756 = vmatpush.bf16.msra.mxu0 %v2725_v41  ;;  %v2847_v8 = vpop.eup %2846  ;;  %v482_v9 = vmul.f32 %v2845_v2, %v481_v7  ;;  %v2799_v7 = vld [vmem:[%s3763_s9 + $0x18] sm:$0xff] }
  0xc7   :  { %1769 = vmatpush.bf16.msra.mxu1 %v2733_v45  ;;  %v495_v12 = vmul.f32 %v2847_v8, %v358_v62  ;;  %vm500_vm5 = vweird.f32 %v2847_v8  ;;  %v2802_v45 = vld [vmem:[%s3763_s9 + $0x30] sm:$0xff] }
  0xc8   :  { %v483_v14 = vadd.f32 %v2845_v2, %v482_v9  ;;  %vm501_vm7 = vmor %vm499_vm6, %vm500_vm5  ;;  %1935 = vmatpush.bf16.msra.mxu3 %v2802_v45 }
  0xc9   :  { %v496_v18 = vsub.f32 1.0, %v495_v12 }
  0xca   :  { %1757 = vmatpush.bf16.msra.mxu0 %v2724_v42  ;;  %v487_v38 = vsel %vm486_vm3, %v2845_v2, %v483_v14 }
  0xcb   :  { %1770 = vmatpush.bf16.msra.mxu1 %v2732_v5  ;;  %v492_v21 = vsel %vm489_vm4, %v491_v17, %v487_v38  ;;  %v497_v24 = vmul.f32 %v2847_v8, %v496_v18  ;;  %v2805_v17 = vld [vmem:[%s3760_s6] ss:$0 sm:$0xff] }
  0xcc   :  { %v517_v25 = vmul.f32 %v492_v21, %v3551_v34  ;;  %1936 = vmatpush.bf16.msra.mxu3 %v2801_v15 }
  0xcd   :  { %v498_v26 = vadd.f32 %v2847_v8, %v497_v24 }
  0xce   :  { %v527_v28 = vpack.c.bf16 %v517_v25, %v517_v25 }
  0xcf   :  { %v502_v29 = vsel %vm501_vm7, %v2847_v8, %v498_v26  ;;  %v2797_v26 = vld [vmem:[%s3763_s9 + $0x8] sm:$0xff] }
  0xd0   :  { %v507_v23 = vsel %vm504_vm8, %v506_v16, %v502_v29  ;;  %1758 = vmatmul.bf16.vlgmr.msra.gmra.mxu0 %v527_v28  ;;  %1937 = vmatpush.bf16.msra.mxu3 %v2800_v60  ;;  %v2796_v28 = vld [vmem:[%s3763_s9] sm:$0xff]  ;;  %s1955_s9 = sshll.u32 %s3765_s11, 4  ;;  %s1956_s9 = int_to_ptr.hbm [resolvable:$true] %s1955_s9 }
  0xd1   :  { %v518_v31 = vmul.f32 %v507_v23, %v3602_v4  ;;  %v2794_v4 = vld [vmem:[%s3761_s7 + $0x30] sm:$0xff]  ;;  %v2806_v16 = vld [vmem:[%s3762_s8] ss:$0 sm:$0xff] }
  0xd2   :  { %1852 = vmatpush.bf16.msra.mxu2 %v2794_v4 }
  0xd3   :  { %v528_v27 = vpack.c.bf16 %v518_v31, %v518_v31 }
  0xd4   :  { %1938 = vmatpush.bf16.msra.mxu3 %v2799_v7 }
  0xd5   :  { %1771 = vmatmul.bf16.vlgmr.msra.gmra.mxu1 %v528_v27 }
  0xd6   :  { %1853 = vmatpush.bf16.msra.mxu2 %v2793_v39 }
  0xd7   :  { %v1149_v22 = vpop.f32.mrf.mxu2 }
  0xd8   :  { %v1150_v20 = vadd.f32 %v1149_v22, %v1137_v33  ;;  %1939 = vmatpush.bf16.msra.mxu3 %v2798_v10  ;;  %v2807_v33 = vld [vmem:[%s3764_s10] ss:$0 sm:$0xff] }
  0xd9   :  { %v1162_v34 = vpop.f32.mrf.mxu3 }
  0xda   :  { %v1163_v35 = vadd.f32 %v1162_v34, %v1150_v20  ;;  %1854 = vmatpush.bf16.msra.mxu2 %v2792_v43 }
  0xdc   :  { %1940 = vmatpush.bf16.msra.mxu3 %v2797_v26 }
  0xde   :  { %1855 = vmatpush.bf16.msra.mxu2 %v2791_v48 }
  0xdf   :  { %v1151_v36 = vpop.f32.mrf.mxu2 }
  0xe0   :  { %1941 = vmatpush.bf16.msra.mxu3 %v2796_v28 }
  0xe1   :  { %v1164_v37 = vpop.f32.mrf.mxu3 }
  0xe2   :  { %1856 = vmatpush.bf16.msra.mxu2 %v2790_v11 }
  0xe6   :  { %1857 = vmatpush.bf16.msra.mxu2 %v2789_v54 }
  0xea   :  { %1858 = vmatpush.bf16.msra.mxu2 %v2788_v56 }
 0x12a   :  { %v1655_v44 = vpop.f32.mrf.mxu0 }
 0x12b   :  { %v1668_v46 = vpop.f32.mrf.mxu1  ;;  %v1656_v50 = vadd.f32 %v1655_v44, %v1163_v35 }
 0x12d   :  { %v1669_v55 = vadd.f32 %v1668_v46, %v1656_v50 }
 0x132   :  { %v1657_v6 = vpop.f32.mrf.mxu0 }
 0x133   :  { %v1670_v49 = vpop.f32.mrf.mxu1 }
 0x137   :  { %v1681_v51 = vpop.f32.mrf.mxu2 }
 0x138   :  { %v1694_v52 = vpop.f32.mrf.mxu3  ;;  %v1682_v57 = vadd.f32 %v1681_v51, %v1669_v55 }
 0x13a   :  { %v1695_v62 = vadd.f32 %v1694_v52, %v1682_v57 }
 0x13c   :  { %v1707_v41 = vpop.f32.mrf.mxu0 }
 0x13d   :  { %v1708_v63 = vadd.f32 %v1707_v41, %v1695_v62 }
 0x13e   :  { %v1720_v53 = vpop.f32.mrf.mxu1 }
 0x13f   :  { %v1683_v58 = vpop.f32.mrf.mxu2  ;;  %v1721_v2 = vadd.f32 %v1720_v53, %v1708_v63 }
 0x140   :  { %v1696_v59 = vpop.f32.mrf.mxu3 }
 0x144   :  { %v1709_v0 = vpop.f32.mrf.mxu0 }
 0x146   :  { %v1722_v1 = vpop.f32.mrf.mxu1 }
 0x147   :  { %v1733_v42 = vpop.f32.mrf.mxu2 }
 0x148   :  { %v1734_v3 = vadd.f32 %v1733_v42, %v1721_v2  ;;  %v1746_v5 = vpop.f32.mrf.mxu3 }
 0x14a   :  { %v1747_v47 = vadd.f32 %v1746_v5, %v1734_v3 }
 0x14d   :  { %v1759_v8 = vpop.f32.mrf.mxu0 }
 0x14e   :  { %v1760_v12 = vadd.f32 %v1759_v8, %v1747_v47 }
 0x14f   :  { %v1735_v9 = vpop.f32.mrf.mxu2 }
 0x150   :  { %v1748_v14 = vpop.f32.mrf.mxu3 }
 0x152   :  { %v1772_v18 = vpop.f32.mrf.mxu1 }
 0x153   :  { %v1773_v38 = vadd.f32 %v1772_v18, %v1760_v12 }
 0x155   :  { %v1780_v19 = vadd.f32 %v2805_v17, %v1773_v38  ;;  %v1761_v21 = vpop.f32.mrf.mxu0 }
 0x157   :  { %v1781_v24 = vmax.f32 %v1780_v19, 0.0 }
 0x159   :  { %v1782_v40 = vpack.c.bf16 %v1781_v24, %v1781_v24 }
 0x15a   :  { %v1774_v25 = vpop.f32.mrf.mxu1 }
 0x15b   :  { %1859 = vmatmul.bf16.vlgmr.msra.gmra.mxu2 %v1782_v40 }
 0x1de   :  { %v1860_v29 = vpop.f32.mrf.mxu2 }
 0x1df   :  { %v1861_v23 = vadd.f32 %v2806_v16, %v1860_v29 }
 0x1e1   :  { %v1864_v31 = vmax.f32 %v1861_v23, 0.0 }
 0x1e3   :  { %v1865_v27 = vpack.c.bf16 %v1864_v31, %v1864_v31 }
 0x1e5   :  { %1942 = vmatmul.bf16.vlgmr.msra.gmra.mxu3 %v1865_v27 }
 0x1e6   :  { %v1862_v32 = vpop.f32.mrf.mxu2 }
 0x268   :  { %v1943_v13 = vpop.f32.mrf.mxu3 }
 0x269   :  { %v1944_v22 = vadd.f32 %v2807_v33, %v1943_v13 }
 0x26b   :  { %1947 = vst [vmem:[#allocation2] sm:$0x3] %v1944_v22 }
 0x26c   :  { %1958 = dma.vmem_to_hbm [thread:$0]  %s1954_s21, 32, %s1956_s9, [#allocation3]  }
 0x270   :  { %v1945_v20 = vpop.f32.mrf.mxu3 }
 0x271   :  { %2872 = dma.done.wait [#allocation3], 32  }
 0x272   :  { %2873 = vsyncadd [#allocation3], 4294967264 }
 0x273   :  { %1963 = vsyncpa [#allocation3], 1 }

</bundles_post_ra>
